<compile_context>
chip_gen: v7x
topology: tpu7x:2x2x1
jax: 0.10.0
libtpu: 0.0.40
codegen_flags: <defaults>
</compile_context>

<pallas_src>
import jax
import jax.numpy as jnp
from jax import lax
from jax.experimental import pallas as pl
from jax.experimental.pallas import tpu as pltpu


def _lstm_recurrence_kernel(xp_ref, whh_ref, h_out_ref):
    """xp_ref:  (T, 4, Bb, H)  precomputed x_t @ W_ih^T + (b_ih + b_hh), per gate
       whh_ref: (4, H, H)      recurrent weights, gate k is (H_in, H_out)
       h_out_ref: (Bb, H)      last hidden state."""
    T = xp_ref.shape[0]
    Bb, H = h_out_ref.shape

    # Recurrent weights loaded once, held in vregs for the whole time loop.
    w_i = whh_ref[0]
    w_f = whh_ref[1]
    w_g = whh_ref[2]
    w_o = whh_ref[3]
    w_dtype = whh_ref.dtype

    def sigmoid(z):
        # sigmoid(x) == 0.5 * (1 + tanh(x/2)) : one EUP transcendental per gate.
        return 0.5 * jnp.tanh(0.5 * z) + 0.5

    def step(t, carry):
        h, c = carry
        xp_t = xp_ref[t]                      # (4, Bb, H) - gate-split, lane dense
        hq = h.astype(w_dtype)
        gi = xp_t[0] + jnp.dot(hq, w_i, preferred_element_type=jnp.float32)
        gf = xp_t[1] + jnp.dot(hq, w_f, preferred_element_type=jnp.float32)
        gg = xp_t[2] + jnp.dot(hq, w_g, preferred_element_type=jnp.float32)
        go = xp_t[3] + jnp.dot(hq, w_o, preferred_element_type=jnp.float32)
        i = sigmoid(gi)
        f = sigmoid(gf)
        g = jnp.tanh(gg)
        o = sigmoid(go)
        c_new = f * c + i * g
        h_new = o * jnp.tanh(c_new)
        return h_new, c_new

    h0 = jnp.zeros((Bb, H), jnp.float32)
    c0 = jnp.zeros((Bb, H), jnp.float32)
    unroll = True if T <= 32 else 8           # give the LLO scheduler room to overlap
    h_last, _ = lax.fori_loop(0, T, step, (h0, c0), unroll=unroll)
    h_out_ref[...] = h_last.astype(h_out_ref.dtype)


def mirshekarian_lstm_forward(x, params, *, batch_block=None,
                              matmul_dtype=jnp.float32):
    """x: (B, T, D_in) float32; params: (w_ih, w_hh, b_ih, b_hh, w_d, b_d) with
    PyTorch layouts w_ih:(4H,D_in) w_hh:(4H,H) b_*:(4H,) w_d:(O,H) b_d:(O,)."""
    w_ih, w_hh, b_ih, b_hh, w_d, b_d = params
    B, T, D_in = x.shape
    H = w_hh.shape[1]

    # ---- hoisted input projection: one large, well-shaped matmul (XLA) ----
    bias = (b_ih + b_hh).astype(jnp.float32)
    xp = x.reshape(B * T, D_in).astype(jnp.float32) @ jnp.transpose(
        w_ih).astype(jnp.float32) + bias                      # (B*T, 4H)
    # gate-split, time-major layout consumed by the kernel: (T, 4, B, H)
    xp = xp.reshape(B, T, 4, H).transpose(1, 2, 0, 3)

    # Recurrent weights: per-gate (H_in, H_out) so h @ whh_split[k] == h @ W_k^T.
    whh_split = jnp.transpose(w_hh.reshape(4, H, H), (0, 2, 1)).astype(matmul_dtype)

    if batch_block is None:
        batch_block = B                      # single block; >1 shards batch across TCs
    nb = pl.cdiv(B, batch_block)

    grid_spec = pltpu.PrefetchScalarGridSpec(
        num_scalar_prefetch=0,
        grid=(nb,),                          # batch axis only; time loop is in-kernel
        in_specs=[
            pl.BlockSpec((T, 4, batch_block, H), lambda b: (0, 0, b, 0)),
            pl.BlockSpec((4, H, H), lambda b: (0, 0, 0)),
            # TODO(synk): for very large H on v7x (64 MiB VMEM), use
            # pipeline_mode=pl.Buffered(1) on the weight spec (or a one-shot
            # manual DMA) to avoid double-buffering the resident weights.
        ],
        out_specs=pl.BlockSpec((batch_block, H), lambda b: (b, 0)),
    )

    h_last = pl.pallas_call(
        _lstm_recurrence_kernel,
        out_shape=jax.ShapeDtypeStruct((B, H), jnp.float32),
        grid_spec=grid_spec,
        compiler_params=pltpu.CompilerParams(
            dimension_semantics=("parallel",)),   # batch blocks are independent
    )(xp.astype(jnp.float32), whh_split)

    # ---- final Linear on the last hidden state (wrapper-side GEMV) ----
    out = h_last @ jnp.transpose(w_d).astype(jnp.float32) + b_d
    return out.astype(x.dtype)


def _reference(x, params):
    """Pure-JAX reference matching torch.nn.LSTM + Linear semantics."""
    w_ih, w_hh, b_ih, b_hh, w_d, b_d = params
    B, T, _ = x.shape
    H = w_hh.shape[1]
    h = jnp.zeros((B, H), jnp.float32)
    c = jnp.zeros((B, H), jnp.float32)
    for t in range(T):
        gates = x[:, t, :] @ w_ih.T + b_ih + h @ w_hh.T + b_hh
        i = jax.nn.sigmoid(gates[:, 0 * H:1 * H])
        f = jax.nn.sigmoid(gates[:, 1 * H:2 * H])
        g = jnp.tanh(gates[:, 2 * H:3 * H])
        o = jax.nn.sigmoid(gates[:, 3 * H:4 * H])
        c = f * c + i * g
        h = o * jnp.tanh(c)
    return h @ w_d.T + b_d


def _init_params(key, input_dim, hidden_dim, output_dim):
    """Deterministic init mimicking PyTorch default U(-1/sqrt(fan), 1/sqrt(fan))."""
    ks = jax.random.split(key, 6)
    k_lstm = 1.0 / jnp.sqrt(hidden_dim)
    k_lin = 1.0 / jnp.sqrt(hidden_dim)
    w_ih = jax.random.uniform(ks[0], (4 * hidden_dim, input_dim),
                              jnp.float32, -k_lstm, k_lstm)
    w_hh = jax.random.uniform(ks[1], (4 * hidden_dim, hidden_dim),
                              jnp.float32, -k_lstm, k_lstm)
    b_ih = jax.random.uniform(ks[2], (4 * hidden_dim,),
                              jnp.float32, -k_lstm, k_lstm)
    b_hh = jax.random.uniform(ks[3], (4 * hidden_dim,),
                              jnp.float32, -k_lstm, k_lstm)
    w_d = jax.random.uniform(ks[4], (output_dim, hidden_dim),
                             jnp.float32, -k_lin, k_lin)
    b_d = jax.random.uniform(ks[5], (output_dim,),
                             jnp.float32, -k_lin, k_lin)
    return (w_ih, w_hh, b_ih, b_hh, w_d, b_d)


if __name__ == "__main__":
    B, T, D_IN, H, O = 2, 8, 4, 32, 1

    key = jax.random.PRNGKey(0)
    k_x, k_p = jax.random.split(key)
    x = jax.random.normal(k_x, (B, T, D_IN), jnp.float32)
    params = _init_params(k_p, D_IN, H, O)

    out = mirshekarian_lstm_forward(x, params)
    out = jax.block_until_ready(out)

    ref = _reference(x, params)
    assert out.shape == (B, O), out.shape
    assert jnp.allclose(out, ref, atol=2e-5, rtol=1e-4), (out, ref)

    print("KERNEL_OK")
</pallas_src>

<mosaic_0001>
module attributes {stable_mosaic.version = 11 : i64} {
  func.func @_lstm_recurrence_kernel(%arg0: i32, %arg1: memref<8x4x2x32xf32, #tpu.memory_space<vmem>>, %arg2: memref<4x32x32xf32, #tpu.memory_space<vmem>>, %arg3: memref<2x32xf32, #tpu.memory_space<vmem>>) attributes {dimension_semantics = [#tpu.dimension_semantics<parallel>], iteration_bounds = array<i64: 1>, scalar_prefetch = 0 : i64, scratch_operands = 0 : i64, tpu.core_type = #tpu.core_type<tc>, window_params = [{transform_indices = @transform_0, window_bounds = array<i64: 8, 4, 2, 32>}, {pipeline_mode = #tpu.pipeline_mode<synchronous>, transform_indices = @transform_1, window_bounds = array<i64: 4, 32, 32>}, {transform_indices = @transform_2, window_bounds = array<i64: 2, 32>}]} {
    %c0 = arith.constant 0 : index
    %c0_0 = arith.constant 0 : index
    %c0_1 = arith.constant 0 : index
    %0 = vector.load %arg2[%c0, %c0_0, %c0_1] : memref<4x32x32xf32, #tpu.memory_space<vmem>>, vector<1x32x32xf32>
    %1 = vector.shape_cast %0 : vector<1x32x32xf32> to vector<32x32xf32>
    %c1 = arith.constant 1 : index
    %c0_2 = arith.constant 0 : index
    %c0_3 = arith.constant 0 : index
    %2 = vector.load %arg2[%c1, %c0_2, %c0_3] : memref<4x32x32xf32, #tpu.memory_space<vmem>>, vector<1x32x32xf32>
    %3 = vector.shape_cast %2 : vector<1x32x32xf32> to vector<32x32xf32>
    %c2 = arith.constant 2 : index
    %c0_4 = arith.constant 0 : index
    %c0_5 = arith.constant 0 : index
    %4 = vector.load %arg2[%c2, %c0_4, %c0_5] : memref<4x32x32xf32, #tpu.memory_space<vmem>>, vector<1x32x32xf32>
    %5 = vector.shape_cast %4 : vector<1x32x32xf32> to vector<32x32xf32>
    %c3 = arith.constant 3 : index
    %c0_6 = arith.constant 0 : index
    %c0_7 = arith.constant 0 : index
    %6 = vector.load %arg2[%c3, %c0_6, %c0_7] : memref<4x32x32xf32, #tpu.memory_space<vmem>>, vector<1x32x32xf32>
    %7 = vector.shape_cast %6 : vector<1x32x32xf32> to vector<32x32xf32>
    %cst = arith.constant 0.000000e+00 : f32
    %8 = vector.broadcast %cst : f32 to vector<2x32xf32>
    %cst_8 = arith.constant 0.000000e+00 : f32
    %9 = vector.broadcast %cst_8 : f32 to vector<2x32xf32>
    %c0_i32 = arith.constant 0 : i32
    %10 = arith.index_cast %c0_i32 : i32 to index
    %c0_9 = arith.constant 0 : index
    %c0_10 = arith.constant 0 : index
    %c0_11 = arith.constant 0 : index
    %11 = vector.load %arg1[%10, %c0_9, %c0_10, %c0_11] : memref<8x4x2x32xf32, #tpu.memory_space<vmem>>, vector<1x4x2x32xf32>
    %12 = vector.shape_cast %11 : vector<1x4x2x32xf32> to vector<4x2x32xf32>
    %13 = vector.extract_strided_slice %12 {offsets = [0, 0, 0], sizes = [1, 2, 32], strides = [1, 1, 1]} : vector<4x2x32xf32> to vector<1x2x32xf32>
    %14 = vector.shape_cast %13 : vector<1x2x32xf32> to vector<2x32xf32>
    %cst_12 = arith.constant dense<0.000000e+00> : vector<2x32xf32>
    %15 = tpu.matmul %8, %1, %cst_12 {dimension_numbers = #tpu.dot_dimension_numbers<[1], [0], [0], [1], [0, 0, 1, 1], [], []>} : vector<2x32xf32>, vector<32x32xf32>, vector<2x32xf32> -> vector<2x32xf32>
    %16 = arith.addf %14, %15 : vector<2x32xf32>
    %17 = vector.extract_strided_slice %12 {offsets = [1, 0, 0], sizes = [1, 2, 32], strides = [1, 1, 1]} : vector<4x2x32xf32> to vector<1x2x32xf32>
    %18 = vector.shape_cast %17 : vector<1x2x32xf32> to vector<2x32xf32>
    %cst_13 = arith.constant dense<0.000000e+00> : vector<2x32xf32>
    %19 = tpu.matmul %8, %3, %cst_13 {dimension_numbers = #tpu.dot_dimension_numbers<[1], [0], [0], [1], [0, 0, 1, 1], [], []>} : vector<2x32xf32>, vector<32x32xf32>, vector<2x32xf32> -> vector<2x32xf32>
    %20 = arith.addf %18, %19 : vector<2x32xf32>
    %21 = vector.extract_strided_slice %12 {offsets = [2, 0, 0], sizes = [1, 2, 32], strides = [1, 1, 1]} : vector<4x2x32xf32> to vector<1x2x32xf32>
    %22 = vector.shape_cast %21 : vector<1x2x32xf32> to vector<2x32xf32>
    %cst_14 = arith.constant dense<0.000000e+00> : vector<2x32xf32>
    %23 = tpu.matmul %8, %5, %cst_14 {dimension_numbers = #tpu.dot_dimension_numbers<[1], [0], [0], [1], [0, 0, 1, 1], [], []>} : vector<2x32xf32>, vector<32x32xf32>, vector<2x32xf32> -> vector<2x32xf32>
    %24 = arith.addf %22, %23 : vector<2x32xf32>
    %25 = vector.extract_strided_slice %12 {offsets = [3, 0, 0], sizes = [1, 2, 32], strides = [1, 1, 1]} : vector<4x2x32xf32> to vector<1x2x32xf32>
    %26 = vector.shape_cast %25 : vector<1x2x32xf32> to vector<2x32xf32>
    %cst_15 = arith.constant dense<0.000000e+00> : vector<2x32xf32>
    %27 = tpu.matmul %8, %7, %cst_15 {dimension_numbers = #tpu.dot_dimension_numbers<[1], [0], [0], [1], [0, 0, 1, 1], [], []>} : vector<2x32xf32>, vector<32x32xf32>, vector<2x32xf32> -> vector<2x32xf32>
    %28 = arith.addf %26, %27 : vector<2x32xf32>
    %cst_16 = arith.constant 5.000000e-01 : f32
    %29 = vector.broadcast %cst_16 : f32 to vector<2x32xf32>
    %30 = arith.mulf %29, %16 : vector<2x32xf32>
    %31 = math.tanh %30 : vector<2x32xf32>
    %cst_17 = arith.constant 5.000000e-01 : f32
    %32 = vector.broadcast %cst_17 : f32 to vector<2x32xf32>
    %33 = arith.mulf %32, %31 : vector<2x32xf32>
    %cst_18 = arith.constant 5.000000e-01 : f32
    %34 = vector.broadcast %cst_18 : f32 to vector<2x32xf32>
    %35 = arith.addf %33, %34 : vector<2x32xf32>
    %cst_19 = arith.constant 5.000000e-01 : f32
    %36 = vector.broadcast %cst_19 : f32 to vector<2x32xf32>
    %37 = arith.mulf %36, %20 : vector<2x32xf32>
    %38 = math.tanh %37 : vector<2x32xf32>
    %cst_20 = arith.constant 5.000000e-01 : f32
    %39 = vector.broadcast %cst_20 : f32 to vector<2x32xf32>
    %40 = arith.mulf %39, %38 : vector<2x32xf32>
    %cst_21 = arith.constant 5.000000e-01 : f32
    %41 = vector.broadcast %cst_21 : f32 to vector<2x32xf32>
    %42 = arith.addf %40, %41 : vector<2x32xf32>
    %43 = math.tanh %24 : vector<2x32xf32>
    %cst_22 = arith.constant 5.000000e-01 : f32
    %44 = vector.broadcast %cst_22 : f32 to vector<2x32xf32>
    %45 = arith.mulf %44, %28 : vector<2x32xf32>
    %46 = math.tanh %45 : vector<2x32xf32>
    %cst_23 = arith.constant 5.000000e-01 : f32
    %47 = vector.broadcast %cst_23 : f32 to vector<2x32xf32>
    %48 = arith.mulf %47, %46 : vector<2x32xf32>
    %cst_24 = arith.constant 5.000000e-01 : f32
    %49 = vector.broadcast %cst_24 : f32 to vector<2x32xf32>
    %50 = arith.addf %48, %49 : vector<2x32xf32>
    %51 = arith.mulf %42, %9 : vector<2x32xf32>
    %52 = arith.mulf %35, %43 : vector<2x32xf32>
    %53 = arith.addf %51, %52 : vector<2x32xf32>
    %54 = math.tanh %53 : vector<2x32xf32>
    %55 = arith.mulf %50, %54 : vector<2x32xf32>
    %c1_i32 = arith.constant 1 : i32
    %56 = arith.index_cast %c1_i32 : i32 to index
    %c0_25 = arith.constant 0 : index
    %c0_26 = arith.constant 0 : index
    %c0_27 = arith.constant 0 : index
    %57 = vector.load %arg1[%56, %c0_25, %c0_26, %c0_27] : memref<8x4x2x32xf32, #tpu.memory_space<vmem>>, vector<1x4x2x32xf32>
    %58 = vector.shape_cast %57 : vector<1x4x2x32xf32> to vector<4x2x32xf32>
    %59 = vector.extract_strided_slice %58 {offsets = [0, 0, 0], sizes = [1, 2, 32], strides = [1, 1, 1]} : vector<4x2x32xf32> to vector<1x2x32xf32>
    %60 = vector.shape_cast %59 : vector<1x2x32xf32> to vector<2x32xf32>
    %cst_28 = arith.constant dense<0.000000e+00> : vector<2x32xf32>
    %61 = tpu.matmul %55, %1, %cst_28 {dimension_numbers = #tpu.dot_dimension_numbers<[1], [0], [0], [1], [0, 0, 1, 1], [], []>} : vector<2x32xf32>, vector<32x32xf32>, vector<2x32xf32> -> vector<2x32xf32>
    %62 = arith.addf %60, %61 : vector<2x32xf32>
    %63 = vector.extract_strided_slice %58 {offsets = [1, 0, 0], sizes = [1, 2, 32], strides = [1, 1, 1]} : vector<4x2x32xf32> to vector<1x2x32xf32>
    %64 = vector.shape_cast %63 : vector<1x2x32xf32> to vector<2x32xf32>
    %cst_29 = arith.constant dense<0.000000e+00> : vector<2x32xf32>
    %65 = tpu.matmul %55, %3, %cst_29 {dimension_numbers = #tpu.dot_dimension_numbers<[1], [0], [0], [1], [0, 0, 1, 1], [], []>} : vector<2x32xf32>, vector<32x32xf32>, vector<2x32xf32> -> vector<2x32xf32>
    %66 = arith.addf %64, %65 : vector<2x32xf32>
    %67 = vector.extract_strided_slice %58 {offsets = [2, 0, 0], sizes = [1, 2, 32], strides = [1, 1, 1]} : vector<4x2x32xf32> to vector<1x2x32xf32>
    %68 = vector.shape_cast %67 : vector<1x2x32xf32> to vector<2x32xf32>
    %cst_30 = arith.constant dense<0.000000e+00> : vector<2x32xf32>
    %69 = tpu.matmul %55, %5, %cst_30 {dimension_numbers = #tpu.dot_dimension_numbers<[1], [0], [0], [1], [0, 0, 1, 1], [], []>} : vector<2x32xf32>, vector<32x32xf32>, vector<2x32xf32> -> vector<2x32xf32>
    %70 = arith.addf %68, %69 : vector<2x32xf32>
    %71 = vector.extract_strided_slice %58 {offsets = [3, 0, 0], sizes = [1, 2, 32], strides = [1, 1, 1]} : vector<4x2x32xf32> to vector<1x2x32xf32>
    %72 = vector.shape_cast %71 : vector<1x2x32xf32> to vector<2x32xf32>
    %cst_31 = arith.constant dense<0.000000e+00> : vector<2x32xf32>
    %73 = tpu.matmul %55, %7, %cst_31 {dimension_numbers = #tpu.dot_dimension_numbers<[1], [0], [0], [1], [0, 0, 1, 1], [], []>} : vector<2x32xf32>, vector<32x32xf32>, vector<2x32xf32> -> vector<2x32xf32>
    %74 = arith.addf %72, %73 : vector<2x32xf32>
    %cst_32 = arith.constant 5.000000e-01 : f32
    %75 = vector.broadcast %cst_32 : f32 to vector<2x32xf32>
    %76 = arith.mulf %75, %62 : vector<2x32xf32>
    %77 = math.tanh %76 : vector<2x32xf32>
    %cst_33 = arith.constant 5.000000e-01 : f32
    %78 = vector.broadcast %cst_33 : f32 to vector<2x32xf32>
    %79 = arith.mulf %78, %77 : vector<2x32xf32>
    %cst_34 = arith.constant 5.000000e-01 : f32
    %80 = vector.broadcast %cst_34 : f32 to vector<2x32xf32>
    %81 = arith.addf %79, %80 : vector<2x32xf32>
    %cst_35 = arith.constant 5.000000e-01 : f32
    %82 = vector.broadcast %cst_35 : f32 to vector<2x32xf32>
    %83 = arith.mulf %82, %66 : vector<2x32xf32>
    %84 = math.tanh %83 : vector<2x32xf32>
    %cst_36 = arith.constant 5.000000e-01 : f32
    %85 = vector.broadcast %cst_36 : f32 to vector<2x32xf32>
    %86 = arith.mulf %85, %84 : vector<2x32xf32>
    %cst_37 = arith.constant 5.000000e-01 : f32
    %87 = vector.broadcast %cst_37 : f32 to vector<2x32xf32>
    %88 = arith.addf %86, %87 : vector<2x32xf32>
    %89 = math.tanh %70 : vector<2x32xf32>
    %cst_38 = arith.constant 5.000000e-01 : f32
    %90 = vector.broadcast %cst_38 : f32 to vector<2x32xf32>
    %91 = arith.mulf %90, %74 : vector<2x32xf32>
    %92 = math.tanh %91 : vector<2x32xf32>
    %cst_39 = arith.constant 5.000000e-01 : f32
    %93 = vector.broadcast %cst_39 : f32 to vector<2x32xf32>
    %94 = arith.mulf %93, %92 : vector<2x32xf32>
    %cst_40 = arith.constant 5.000000e-01 : f32
    %95 = vector.broadcast %cst_40 : f32 to vector<2x32xf32>
    %96 = arith.addf %94, %95 : vector<2x32xf32>
    %97 = arith.mulf %88, %53 : vector<2x32xf32>
    %98 = arith.mulf %81, %89 : vector<2x32xf32>
    %99 = arith.addf %97, %98 : vector<2x32xf32>
    %100 = math.tanh %99 : vector<2x32xf32>
    %101 = arith.mulf %96, %100 : vector<2x32xf32>
    %c2_i32 = arith.constant 2 : i32
    %102 = arith.index_cast %c2_i32 : i32 to index
    %c0_41 = arith.constant 0 : index
    %c0_42 = arith.constant 0 : index
    %c0_43 = arith.constant 0 : index
    %103 = vector.load %arg1[%102, %c0_41, %c0_42, %c0_43] : memref<8x4x2x32xf32, #tpu.memory_space<vmem>>, vector<1x4x2x32xf32>
    %104 = vector.shape_cast %103 : vector<1x4x2x32xf32> to vector<4x2x32xf32>
    %105 = vector.extract_strided_slice %104 {offsets = [0, 0, 0], sizes = [1, 2, 32], strides = [1, 1, 1]} : vector<4x2x32xf32> to vector<1x2x32xf32>
    %106 = vector.shape_cast %105 : vector<1x2x32xf32> to vector<2x32xf32>
    %cst_44 = arith.constant dense<0.000000e+00> : vector<2x32xf32>
    %107 = tpu.matmul %101, %1, %cst_44 {dimension_numbers = #tpu.dot_dimension_numbers<[1], [0], [0], [1], [0, 0, 1, 1], [], []>} : vector<2x32xf32>, vector<32x32xf32>, vector<2x32xf32> -> vector<2x32xf32>
    %108 = arith.addf %106, %107 : vector<2x32xf32>
    %109 = vector.extract_strided_slice %104 {offsets = [1, 0, 0], sizes = [1, 2, 32], strides = [1, 1, 1]} : vector<4x2x32xf32> to vector<1x2x32xf32>
    %110 = vector.shape_cast %109 : vector<1x2x32xf32> to vector<2x32xf32>
    %cst_45 = arith.constant dense<0.000000e+00> : vector<2x32xf32>
    %111 = tpu.matmul %101, %3, %cst_45 {dimension_numbers = #tpu.dot_dimension_numbers<[1], [0], [0], [1], [0, 0, 1, 1], [], []>} : vector<2x32xf32>, vector<32x32xf32>, vector<2x32xf32> -> vector<2x32xf32>
    %112 = arith.addf %110, %111 : vector<2x32xf32>
    %113 = vector.extract_strided_slice %104 {offsets = [2, 0, 0], sizes = [1, 2, 32], strides = [1, 1, 1]} : vector<4x2x32xf32> to vector<1x2x32xf32>
    %114 = vector.shape_cast %113 : vector<1x2x32xf32> to vector<2x32xf32>
    %cst_46 = arith.constant dense<0.000000e+00> : vector<2x32xf32>
    %115 = tpu.matmul %101, %5, %cst_46 {dimension_numbers = #tpu.dot_dimension_numbers<[1], [0], [0], [1], [0, 0, 1, 1], [], []>} : vector<2x32xf32>, vector<32x32xf32>, vector<2x32xf32> -> vector<2x32xf32>
    %116 = arith.addf %114, %115 : vector<2x32xf32>
    %117 = vector.extract_strided_slice %104 {offsets = [3, 0, 0], sizes = [1, 2, 32], strides = [1, 1, 1]} : vector<4x2x32xf32> to vector<1x2x32xf32>
    %118 = vector.shape_cast %117 : vector<1x2x32xf32> to vector<2x32xf32>
    %cst_47 = arith.constant dense<0.000000e+00> : vector<2x32xf32>
    %119 = tpu.matmul %101, %7, %cst_47 {dimension_numbers = #tpu.dot_dimension_numbers<[1], [0], [0], [1], [0, 0, 1, 1], [], []>} : vector<2x32xf32>, vector<32x32xf32>, vector<2x32xf32> -> vector<2x32xf32>
    %120 = arith.addf %118, %119 : vector<2x32xf32>
    %cst_48 = arith.constant 5.000000e-01 : f32
    %121 = vector.broadcast %cst_48 : f32 to vector<2x32xf32>
    %122 = arith.mulf %121, %108 : vector<2x32xf32>
    %123 = math.tanh %122 : vector<2x32xf32>
    %cst_49 = arith.constant 5.000000e-01 : f32
    %124 = vector.broadcast %cst_49 : f32 to vector<2x32xf32>
    %125 = arith.mulf %124, %123 : vector<2x32xf32>
    %cst_50 = arith.constant 5.000000e-01 : f32
    %126 = vector.broadcast %cst_50 : f32 to vector<2x32xf32>
    %127 = arith.addf %125, %126 : vector<2x32xf32>
    %cst_51 = arith.constant 5.000000e-01 : f32
    %128 = vector.broadcast %cst_51 : f32 to vector<2x32xf32>
    %129 = arith.mulf %128, %112 : vector<2x32xf32>
    %130 = math.tanh %129 : vector<2x32xf32>
    %cst_52 = arith.constant 5.000000e-01 : f32
    %131 = vector.broadcast %cst_52 : f32 to vector<2x32xf32>
    %132 = arith.mulf %131, %130 : vector<2x32xf32>
    %cst_53 = arith.constant 5.000000e-01 : f32
    %133 = vector.broadcast %cst_53 : f32 to vector<2x32xf32>
    %134 = arith.addf %132, %133 : vector<2x32xf32>
    %135 = math.tanh %116 : vector<2x32xf32>
    %cst_54 = arith.constant 5.000000e-01 : f32
    %136 = vector.broadcast %cst_54 : f32 to vector<2x32xf32>
    %137 = arith.mulf %136, %120 : vector<2x32xf32>
    %138 = math.tanh %137 : vector<2x32xf32>
    %cst_55 = arith.constant 5.000000e-01 : f32
    %139 = vector.broadcast %cst_55 : f32 to vector<2x32xf32>
    %140 = arith.mulf %139, %138 : vector<2x32xf32>
    %cst_56 = arith.constant 5.000000e-01 : f32
    %141 = vector.broadcast %cst_56 : f32 to vector<2x32xf32>
    %142 = arith.addf %140, %141 : vector<2x32xf32>
    %143 = arith.mulf %134, %99 : vector<2x32xf32>
    %144 = arith.mulf %127, %135 : vector<2x32xf32>
    %145 = arith.addf %143, %144 : vector<2x32xf32>
    %146 = math.tanh %145 : vector<2x32xf32>
    %147 = arith.mulf %142, %146 : vector<2x32xf32>
    %c3_i32 = arith.constant 3 : i32
    %148 = arith.index_cast %c3_i32 : i32 to index
    %c0_57 = arith.constant 0 : index
    %c0_58 = arith.constant 0 : index
    %c0_59 = arith.constant 0 : index
    %149 = vector.load %arg1[%148, %c0_57, %c0_58, %c0_59] : memref<8x4x2x32xf32, #tpu.memory_space<vmem>>, vector<1x4x2x32xf32>
    %150 = vector.shape_cast %149 : vector<1x4x2x32xf32> to vector<4x2x32xf32>
    %151 = vector.extract_strided_slice %150 {offsets = [0, 0, 0], sizes = [1, 2, 32], strides = [1, 1, 1]} : vector<4x2x32xf32> to vector<1x2x32xf32>
    %152 = vector.shape_cast %151 : vector<1x2x32xf32> to vector<2x32xf32>
    %cst_60 = arith.constant dense<0.000000e+00> : vector<2x32xf32>
    %153 = tpu.matmul %147, %1, %cst_60 {dimension_numbers = #tpu.dot_dimension_numbers<[1], [0], [0], [1], [0, 0, 1, 1], [], []>} : vector<2x32xf32>, vector<32x32xf32>, vector<2x32xf32> -> vector<2x32xf32>
    %154 = arith.addf %152, %153 : vector<2x32xf32>
    %155 = vector.extract_strided_slice %150 {offsets = [1, 0, 0], sizes = [1, 2, 32], strides = [1, 1, 1]} : vector<4x2x32xf32> to vector<1x2x32xf32>
    %156 = vector.shape_cast %155 : vector<1x2x32xf32> to vector<2x32xf32>
    %cst_61 = arith.constant dense<0.000000e+00> : vector<2x32xf32>
    %157 = tpu.matmul %147, %3, %cst_61 {dimension_numbers = #tpu.dot_dimension_numbers<[1], [0], [0], [1], [0, 0, 1, 1], [], []>} : vector<2x32xf32>, vector<32x32xf32>, vector<2x32xf32> -> vector<2x32xf32>
    %158 = arith.addf %156, %157 : vector<2x32xf32>
    %159 = vector.extract_strided_slice %150 {offsets = [2, 0, 0], sizes = [1, 2, 32], strides = [1, 1, 1]} : vector<4x2x32xf32> to vector<1x2x32xf32>
    %160 = vector.shape_cast %159 : vector<1x2x32xf32> to vector<2x32xf32>
    %cst_62 = arith.constant dense<0.000000e+00> : vector<2x32xf32>
    %161 = tpu.matmul %147, %5, %cst_62 {dimension_numbers = #tpu.dot_dimension_numbers<[1], [0], [0], [1], [0, 0, 1, 1], [], []>} : vector<2x32xf32>, vector<32x32xf32>, vector<2x32xf32> -> vector<2x32xf32>
    %162 = arith.addf %160, %161 : vector<2x32xf32>
    %163 = vector.extract_strided_slice %150 {offsets = [3, 0, 0], sizes = [1, 2, 32], strides = [1, 1, 1]} : vector<4x2x32xf32> to vector<1x2x32xf32>
    %164 = vector.shape_cast %163 : vector<1x2x32xf32> to vector<2x32xf32>
    %cst_63 = arith.constant dense<0.000000e+00> : vector<2x32xf32>
    %165 = tpu.matmul %147, %7, %cst_63 {dimension_numbers = #tpu.dot_dimension_numbers<[1], [0], [0], [1], [0, 0, 1, 1], [], []>} : vector<2x32xf32>, vector<32x32xf32>, vector<2x32xf32> -> vector<2x32xf32>
    %166 = arith.addf %164, %165 : vector<2x32xf32>
    %cst_64 = arith.constant 5.000000e-01 : f32
    %167 = vector.broadcast %cst_64 : f32 to vector<2x32xf32>
    %168 = arith.mulf %167, %154 : vector<2x32xf32>
    %169 = math.tanh %168 : vector<2x32xf32>
    %cst_65 = arith.constant 5.000000e-01 : f32
    %170 = vector.broadcast %cst_65 : f32 to vector<2x32xf32>
    %171 = arith.mulf %170, %169 : vector<2x32xf32>
    %cst_66 = arith.constant 5.000000e-01 : f32
    %172 = vector.broadcast %cst_66 : f32 to vector<2x32xf32>
    %173 = arith.addf %171, %172 : vector<2x32xf32>
    %cst_67 = arith.constant 5.000000e-01 : f32
    %174 = vector.broadcast %cst_67 : f32 to vector<2x32xf32>
    %175 = arith.mulf %174, %158 : vector<2x32xf32>
    %176 = math.tanh %175 : vector<2x32xf32>
    %cst_68 = arith.constant 5.000000e-01 : f32
    %177 = vector.broadcast %cst_68 : f32 to vector<2x32xf32>
    %178 = arith.mulf %177, %176 : vector<2x32xf32>
    %cst_69 = arith.constant 5.000000e-01 : f32
    %179 = vector.broadcast %cst_69 : f32 to vector<2x32xf32>
    %180 = arith.addf %178, %179 : vector<2x32xf32>
    %181 = math.tanh %162 : vector<2x32xf32>
    %cst_70 = arith.constant 5.000000e-01 : f32
    %182 = vector.broadcast %cst_70 : f32 to vector<2x32xf32>
    %183 = arith.mulf %182, %166 : vector<2x32xf32>
    %184 = math.tanh %183 : vector<2x32xf32>
    %cst_71 = arith.constant 5.000000e-01 : f32
    %185 = vector.broadcast %cst_71 : f32 to vector<2x32xf32>
    %186 = arith.mulf %185, %184 : vector<2x32xf32>
    %cst_72 = arith.constant 5.000000e-01 : f32
    %187 = vector.broadcast %cst_72 : f32 to vector<2x32xf32>
    %188 = arith.addf %186, %187 : vector<2x32xf32>
    %189 = arith.mulf %180, %145 : vector<2x32xf32>
    %190 = arith.mulf %173, %181 : vector<2x32xf32>
    %191 = arith.addf %189, %190 : vector<2x32xf32>
    %192 = math.tanh %191 : vector<2x32xf32>
    %193 = arith.mulf %188, %192 : vector<2x32xf32>
    %c4_i32 = arith.constant 4 : i32
    %194 = arith.index_cast %c4_i32 : i32 to index
    %c0_73 = arith.constant 0 : index
    %c0_74 = arith.constant 0 : index
    %c0_75 = arith.constant 0 : index
    %195 = vector.load %arg1[%194, %c0_73, %c0_74, %c0_75] : memref<8x4x2x32xf32, #tpu.memory_space<vmem>>, vector<1x4x2x32xf32>
    %196 = vector.shape_cast %195 : vector<1x4x2x32xf32> to vector<4x2x32xf32>
    %197 = vector.extract_strided_slice %196 {offsets = [0, 0, 0], sizes = [1, 2, 32], strides = [1, 1, 1]} : vector<4x2x32xf32> to vector<1x2x32xf32>
    %198 = vector.shape_cast %197 : vector<1x2x32xf32> to vector<2x32xf32>
    %cst_76 = arith.constant dense<0.000000e+00> : vector<2x32xf32>
    %199 = tpu.matmul %193, %1, %cst_76 {dimension_numbers = #tpu.dot_dimension_numbers<[1], [0], [0], [1], [0, 0, 1, 1], [], []>} : vector<2x32xf32>, vector<32x32xf32>, vector<2x32xf32> -> vector<2x32xf32>
    %200 = arith.addf %198, %199 : vector<2x32xf32>
    %201 = vector.extract_strided_slice %196 {offsets = [1, 0, 0], sizes = [1, 2, 32], strides = [1, 1, 1]} : vector<4x2x32xf32> to vector<1x2x32xf32>
    %202 = vector.shape_cast %201 : vector<1x2x32xf32> to vector<2x32xf32>
    %cst_77 = arith.constant dense<0.000000e+00> : vector<2x32xf32>
    %203 = tpu.matmul %193, %3, %cst_77 {dimension_numbers = #tpu.dot_dimension_numbers<[1], [0], [0], [1], [0, 0, 1, 1], [], []>} : vector<2x32xf32>, vector<32x32xf32>, vector<2x32xf32> -> vector<2x32xf32>
    %204 = arith.addf %202, %203 : vector<2x32xf32>
    %205 = vector.extract_strided_slice %196 {offsets = [2, 0, 0], sizes = [1, 2, 32], strides = [1, 1, 1]} : vector<4x2x32xf32> to vector<1x2x32xf32>
    %206 = vector.shape_cast %205 : vector<1x2x32xf32> to vector<2x32xf32>
    %cst_78 = arith.constant dense<0.000000e+00> : vector<2x32xf32>
    %207 = tpu.matmul %193, %5, %cst_78 {dimension_numbers = #tpu.dot_dimension_numbers<[1], [0], [0], [1], [0, 0, 1, 1], [], []>} : vector<2x32xf32>, vector<32x32xf32>, vector<2x32xf32> -> vector<2x32xf32>
    %208 = arith.addf %206, %207 : vector<2x32xf32>
    %209 = vector.extract_strided_slice %196 {offsets = [3, 0, 0], sizes = [1, 2, 32], strides = [1, 1, 1]} : vector<4x2x32xf32> to vector<1x2x32xf32>
    %210 = vector.shape_cast %209 : vector<1x2x32xf32> to vector<2x32xf32>
    %cst_79 = arith.constant dense<0.000000e+00> : vector<2x32xf32>
    %211 = tpu.matmul %193, %7, %cst_79 {dimension_numbers = #tpu.dot_dimension_numbers<[1], [0], [0], [1], [0, 0, 1, 1], [], []>} : vector<2x32xf32>, vector<32x32xf32>, vector<2x32xf32> -> vector<2x32xf32>
    %212 = arith.addf %210, %211 : vector<2x32xf32>
    %cst_80 = arith.constant 5.000000e-01 : f32
    %213 = vector.broadcast %cst_80 : f32 to vector<2x32xf32>
    %214 = arith.mulf %213, %200 : vector<2x32xf32>
    %215 = math.tanh %214 : vector<2x32xf32>
    %cst_81 = arith.constant 5.000000e-01 : f32
    %216 = vector.broadcast %cst_81 : f32 to vector<2x32xf32>
    %217 = arith.mulf %216, %215 : vector<2x32xf32>
    %cst_82 = arith.constant 5.000000e-01 : f32
    %218 = vector.broadcast %cst_82 : f32 to vector<2x32xf32>
    %219 = arith.addf %217, %218 : vector<2x32xf32>
    %cst_83 = arith.constant 5.000000e-01 : f32
    %220 = vector.broadcast %cst_83 : f32 to vector<2x32xf32>
    %221 = arith.mulf %220, %204 : vector<2x32xf32>
    %222 = math.tanh %221 : vector<2x32xf32>
    %cst_84 = arith.constant 5.000000e-01 : f32
    %223 = vector.broadcast %cst_84 : f32 to vector<2x32xf32>
    %224 = arith.mulf %223, %222 : vector<2x32xf32>
    %cst_85 = arith.constant 5.000000e-01 : f32
    %225 = vector.broadcast %cst_85 : f32 to vector<2x32xf32>
    %226 = arith.addf %224, %225 : vector<2x32xf32>
    %227 = math.tanh %208 : vector<2x32xf32>
    %cst_86 = arith.constant 5.000000e-01 : f32
    %228 = vector.broadcast %cst_86 : f32 to vector<2x32xf32>
    %229 = arith.mulf %228, %212 : vector<2x32xf32>
    %230 = math.tanh %229 : vector<2x32xf32>
    %cst_87 = arith.constant 5.000000e-01 : f32
    %231 = vector.broadcast %cst_87 : f32 to vector<2x32xf32>
    %232 = arith.mulf %231, %230 : vector<2x32xf32>
    %cst_88 = arith.constant 5.000000e-01 : f32
    %233 = vector.broadcast %cst_88 : f32 to vector<2x32xf32>
    %234 = arith.addf %232, %233 : vector<2x32xf32>
    %235 = arith.mulf %226, %191 : vector<2x32xf32>
    %236 = arith.mulf %219, %227 : vector<2x32xf32>
    %237 = arith.addf %235, %236 : vector<2x32xf32>
    %238 = math.tanh %237 : vector<2x32xf32>
    %239 = arith.mulf %234, %238 : vector<2x32xf32>
    %c5_i32 = arith.constant 5 : i32
    %240 = arith.index_cast %c5_i32 : i32 to index
    %c0_89 = arith.constant 0 : index
    %c0_90 = arith.constant 0 : index
    %c0_91 = arith.constant 0 : index
    %241 = vector.load %arg1[%240, %c0_89, %c0_90, %c0_91] : memref<8x4x2x32xf32, #tpu.memory_space<vmem>>, vector<1x4x2x32xf32>
    %242 = vector.shape_cast %241 : vector<1x4x2x32xf32> to vector<4x2x32xf32>
    %243 = vector.extract_strided_slice %242 {offsets = [0, 0, 0], sizes = [1, 2, 32], strides = [1, 1, 1]} : vector<4x2x32xf32> to vector<1x2x32xf32>
    %244 = vector.shape_cast %243 : vector<1x2x32xf32> to vector<2x32xf32>
    %cst_92 = arith.constant dense<0.000000e+00> : vector<2x32xf32>
    %245 = tpu.matmul %239, %1, %cst_92 {dimension_numbers = #tpu.dot_dimension_numbers<[1], [0], [0], [1], [0, 0, 1, 1], [], []>} : vector<2x32xf32>, vector<32x32xf32>, vector<2x32xf32> -> vector<2x32xf32>
    %246 = arith.addf %244, %245 : vector<2x32xf32>
    %247 = vector.extract_strided_slice %242 {offsets = [1, 0, 0], sizes = [1, 2, 32], strides = [1, 1, 1]} : vector<4x2x32xf32> to vector<1x2x32xf32>
    %248 = vector.shape_cast %247 : vector<1x2x32xf32> to vector<2x32xf32>
    %cst_93 = arith.constant dense<0.000000e+00> : vector<2x32xf32>
    %249 = tpu.matmul %239, %3, %cst_93 {dimension_numbers = #tpu.dot_dimension_numbers<[1], [0], [0], [1], [0, 0, 1, 1], [], []>} : vector<2x32xf32>, vector<32x32xf32>, vector<2x32xf32> -> vector<2x32xf32>
    %250 = arith.addf %248, %249 : vector<2x32xf32>
    %251 = vector.extract_strided_slice %242 {offsets = [2, 0, 0], sizes = [1, 2, 32], strides = [1, 1, 1]} : vector<4x2x32xf32> to vector<1x2x32xf32>
    %252 = vector.shape_cast %251 : vector<1x2x32xf32> to vector<2x32xf32>
    %cst_94 = arith.constant dense<0.000000e+00> : vector<2x32xf32>
    %253 = tpu.matmul %239, %5, %cst_94 {dimension_numbers = #tpu.dot_dimension_numbers<[1], [0], [0], [1], [0, 0, 1, 1], [], []>} : vector<2x32xf32>, vector<32x32xf32>, vector<2x32xf32> -> vector<2x32xf32>
    %254 = arith.addf %252, %253 : vector<2x32xf32>
    %255 = vector.extract_strided_slice %242 {offsets = [3, 0, 0], sizes = [1, 2, 32], strides = [1, 1, 1]} : vector<4x2x32xf32> to vector<1x2x32xf32>
    %256 = vector.shape_cast %255 : vector<1x2x32xf32> to vector<2x32xf32>
    %cst_95 = arith.constant dense<0.000000e+00> : vector<2x32xf32>
    %257 = tpu.matmul %239, %7, %cst_95 {dimension_numbers = #tpu.dot_dimension_numbers<[1], [0], [0], [1], [0, 0, 1, 1], [], []>} : vector<2x32xf32>, vector<32x32xf32>, vector<2x32xf32> -> vector<2x32xf32>
    %258 = arith.addf %256, %257 : vector<2x32xf32>
    %cst_96 = arith.constant 5.000000e-01 : f32
    %259 = vector.broadcast %cst_96 : f32 to vector<2x32xf32>
    %260 = arith.mulf %259, %246 : vector<2x32xf32>
    %261 = math.tanh %260 : vector<2x32xf32>
    %cst_97 = arith.constant 5.000000e-01 : f32
    %262 = vector.broadcast %cst_97 : f32 to vector<2x32xf32>
    %263 = arith.mulf %262, %261 : vector<2x32xf32>
    %cst_98 = arith.constant 5.000000e-01 : f32
    %264 = vector.broadcast %cst_98 : f32 to vector<2x32xf32>
    %265 = arith.addf %263, %264 : vector<2x32xf32>
    %cst_99 = arith.constant 5.000000e-01 : f32
    %266 = vector.broadcast %cst_99 : f32 to vector<2x32xf32>
    %267 = arith.mulf %266, %250 : vector<2x32xf32>
    %268 = math.tanh %267 : vector<2x32xf32>
    %cst_100 = arith.constant 5.000000e-01 : f32
    %269 = vector.broadcast %cst_100 : f32 to vector<2x32xf32>
    %270 = arith.mulf %269, %268 : vector<2x32xf32>
    %cst_101 = arith.constant 5.000000e-01 : f32
    %271 = vector.broadcast %cst_101 : f32 to vector<2x32xf32>
    %272 = arith.addf %270, %271 : vector<2x32xf32>
    %273 = math.tanh %254 : vector<2x32xf32>
    %cst_102 = arith.constant 5.000000e-01 : f32
    %274 = vector.broadcast %cst_102 : f32 to vector<2x32xf32>
    %275 = arith.mulf %274, %258 : vector<2x32xf32>
    %276 = math.tanh %275 : vector<2x32xf32>
    %cst_103 = arith.constant 5.000000e-01 : f32
    %277 = vector.broadcast %cst_103 : f32 to vector<2x32xf32>
    %278 = arith.mulf %277, %276 : vector<2x32xf32>
    %cst_104 = arith.constant 5.000000e-01 : f32
    %279 = vector.broadcast %cst_104 : f32 to vector<2x32xf32>
    %280 = arith.addf %278, %279 : vector<2x32xf32>
    %281 = arith.mulf %272, %237 : vector<2x32xf32>
    %282 = arith.mulf %265, %273 : vector<2x32xf32>
    %283 = arith.addf %281, %282 : vector<2x32xf32>
    %284 = math.tanh %283 : vector<2x32xf32>
    %285 = arith.mulf %280, %284 : vector<2x32xf32>
    %c6_i32 = arith.constant 6 : i32
    %286 = arith.index_cast %c6_i32 : i32 to index
    %c0_105 = arith.constant 0 : index
    %c0_106 = arith.constant 0 : index
    %c0_107 = arith.constant 0 : index
    %287 = vector.load %arg1[%286, %c0_105, %c0_106, %c0_107] : memref<8x4x2x32xf32, #tpu.memory_space<vmem>>, vector<1x4x2x32xf32>
    %288 = vector.shape_cast %287 : vector<1x4x2x32xf32> to vector<4x2x32xf32>
    %289 = vector.extract_strided_slice %288 {offsets = [0, 0, 0], sizes = [1, 2, 32], strides = [1, 1, 1]} : vector<4x2x32xf32> to vector<1x2x32xf32>
    %290 = vector.shape_cast %289 : vector<1x2x32xf32> to vector<2x32xf32>
    %cst_108 = arith.constant dense<0.000000e+00> : vector<2x32xf32>
    %291 = tpu.matmul %285, %1, %cst_108 {dimension_numbers = #tpu.dot_dimension_numbers<[1], [0], [0], [1], [0, 0, 1, 1], [], []>} : vector<2x32xf32>, vector<32x32xf32>, vector<2x32xf32> -> vector<2x32xf32>
    %292 = arith.addf %290, %291 : vector<2x32xf32>
    %293 = vector.extract_strided_slice %288 {offsets = [1, 0, 0], sizes = [1, 2, 32], strides = [1, 1, 1]} : vector<4x2x32xf32> to vector<1x2x32xf32>
    %294 = vector.shape_cast %293 : vector<1x2x32xf32> to vector<2x32xf32>
    %cst_109 = arith.constant dense<0.000000e+00> : vector<2x32xf32>
    %295 = tpu.matmul %285, %3, %cst_109 {dimension_numbers = #tpu.dot_dimension_numbers<[1], [0], [0], [1], [0, 0, 1, 1], [], []>} : vector<2x32xf32>, vector<32x32xf32>, vector<2x32xf32> -> vector<2x32xf32>
    %296 = arith.addf %294, %295 : vector<2x32xf32>
    %297 = vector.extract_strided_slice %288 {offsets = [2, 0, 0], sizes = [1, 2, 32], strides = [1, 1, 1]} : vector<4x2x32xf32> to vector<1x2x32xf32>
    %298 = vector.shape_cast %297 : vector<1x2x32xf32> to vector<2x32xf32>
    %cst_110 = arith.constant dense<0.000000e+00> : vector<2x32xf32>
    %299 = tpu.matmul %285, %5, %cst_110 {dimension_numbers = #tpu.dot_dimension_numbers<[1], [0], [0], [1], [0, 0, 1, 1], [], []>} : vector<2x32xf32>, vector<32x32xf32>, vector<2x32xf32> -> vector<2x32xf32>
    %300 = arith.addf %298, %299 : vector<2x32xf32>
    %301 = vector.extract_strided_slice %288 {offsets = [3, 0, 0], sizes = [1, 2, 32], strides = [1, 1, 1]} : vector<4x2x32xf32> to vector<1x2x32xf32>
    %302 = vector.shape_cast %301 : vector<1x2x32xf32> to vector<2x32xf32>
    %cst_111 = arith.constant dense<0.000000e+00> : vector<2x32xf32>
    %303 = tpu.matmul %285, %7, %cst_111 {dimension_numbers = #tpu.dot_dimension_numbers<[1], [0], [0], [1], [0, 0, 1, 1], [], []>} : vector<2x32xf32>, vector<32x32xf32>, vector<2x32xf32> -> vector<2x32xf32>
    %304 = arith.addf %302, %303 : vector<2x32xf32>
    %cst_112 = arith.constant 5.000000e-01 : f32
    %305 = vector.broadcast %cst_112 : f32 to vector<2x32xf32>
    %306 = arith.mulf %305, %292 : vector<2x32xf32>
    %307 = math.tanh %306 : vector<2x32xf32>
    %cst_113 = arith.constant 5.000000e-01 : f32
    %308 = vector.broadcast %cst_113 : f32 to vector<2x32xf32>
    %309 = arith.mulf %308, %307 : vector<2x32xf32>
    %cst_114 = arith.constant 5.000000e-01 : f32
    %310 = vector.broadcast %cst_114 : f32 to vector<2x32xf32>
    %311 = arith.addf %309, %310 : vector<2x32xf32>
    %cst_115 = arith.constant 5.000000e-01 : f32
    %312 = vector.broadcast %cst_115 : f32 to vector<2x32xf32>
    %313 = arith.mulf %312, %296 : vector<2x32xf32>
    %314 = math.tanh %313 : vector<2x32xf32>
    %cst_116 = arith.constant 5.000000e-01 : f32
    %315 = vector.broadcast %cst_116 : f32 to vector<2x32xf32>
    %316 = arith.mulf %315, %314 : vector<2x32xf32>
    %cst_117 = arith.constant 5.000000e-01 : f32
    %317 = vector.broadcast %cst_117 : f32 to vector<2x32xf32>
    %318 = arith.addf %316, %317 : vector<2x32xf32>
    %319 = math.tanh %300 : vector<2x32xf32>
    %cst_118 = arith.constant 5.000000e-01 : f32
    %320 = vector.broadcast %cst_118 : f32 to vector<2x32xf32>
    %321 = arith.mulf %320, %304 : vector<2x32xf32>
    %322 = math.tanh %321 : vector<2x32xf32>
    %cst_119 = arith.constant 5.000000e-01 : f32
    %323 = vector.broadcast %cst_119 : f32 to vector<2x32xf32>
    %324 = arith.mulf %323, %322 : vector<2x32xf32>
    %cst_120 = arith.constant 5.000000e-01 : f32
    %325 = vector.broadcast %cst_120 : f32 to vector<2x32xf32>
    %326 = arith.addf %324, %325 : vector<2x32xf32>
    %327 = arith.mulf %318, %283 : vector<2x32xf32>
    %328 = arith.mulf %311, %319 : vector<2x32xf32>
    %329 = arith.addf %327, %328 : vector<2x32xf32>
    %330 = math.tanh %329 : vector<2x32xf32>
    %331 = arith.mulf %326, %330 : vector<2x32xf32>
    %c7_i32 = arith.constant 7 : i32
    %332 = arith.index_cast %c7_i32 : i32 to index
    %c0_121 = arith.constant 0 : index
    %c0_122 = arith.constant 0 : index
    %c0_123 = arith.constant 0 : index
    %333 = vector.load %arg1[%332, %c0_121, %c0_122, %c0_123] : memref<8x4x2x32xf32, #tpu.memory_space<vmem>>, vector<1x4x2x32xf32>
    %334 = vector.shape_cast %333 : vector<1x4x2x32xf32> to vector<4x2x32xf32>
    %335 = vector.extract_strided_slice %334 {offsets = [0, 0, 0], sizes = [1, 2, 32], strides = [1, 1, 1]} : vector<4x2x32xf32> to vector<1x2x32xf32>
    %336 = vector.shape_cast %335 : vector<1x2x32xf32> to vector<2x32xf32>
    %cst_124 = arith.constant dense<0.000000e+00> : vector<2x32xf32>
    %337 = tpu.matmul %331, %1, %cst_124 {dimension_numbers = #tpu.dot_dimension_numbers<[1], [0], [0], [1], [0, 0, 1, 1], [], []>} : vector<2x32xf32>, vector<32x32xf32>, vector<2x32xf32> -> vector<2x32xf32>
    %338 = arith.addf %336, %337 : vector<2x32xf32>
    %339 = vector.extract_strided_slice %334 {offsets = [1, 0, 0], sizes = [1, 2, 32], strides = [1, 1, 1]} : vector<4x2x32xf32> to vector<1x2x32xf32>
    %340 = vector.shape_cast %339 : vector<1x2x32xf32> to vector<2x32xf32>
    %cst_125 = arith.constant dense<0.000000e+00> : vector<2x32xf32>
    %341 = tpu.matmul %331, %3, %cst_125 {dimension_numbers = #tpu.dot_dimension_numbers<[1], [0], [0], [1], [0, 0, 1, 1], [], []>} : vector<2x32xf32>, vector<32x32xf32>, vector<2x32xf32> -> vector<2x32xf32>
    %342 = arith.addf %340, %341 : vector<2x32xf32>
    %343 = vector.extract_strided_slice %334 {offsets = [2, 0, 0], sizes = [1, 2, 32], strides = [1, 1, 1]} : vector<4x2x32xf32> to vector<1x2x32xf32>
    %344 = vector.shape_cast %343 : vector<1x2x32xf32> to vector<2x32xf32>
    %cst_126 = arith.constant dense<0.000000e+00> : vector<2x32xf32>
    %345 = tpu.matmul %331, %5, %cst_126 {dimension_numbers = #tpu.dot_dimension_numbers<[1], [0], [0], [1], [0, 0, 1, 1], [], []>} : vector<2x32xf32>, vector<32x32xf32>, vector<2x32xf32> -> vector<2x32xf32>
    %346 = arith.addf %344, %345 : vector<2x32xf32>
    %347 = vector.extract_strided_slice %334 {offsets = [3, 0, 0], sizes = [1, 2, 32], strides = [1, 1, 1]} : vector<4x2x32xf32> to vector<1x2x32xf32>
    %348 = vector.shape_cast %347 : vector<1x2x32xf32> to vector<2x32xf32>
    %cst_127 = arith.constant dense<0.000000e+00> : vector<2x32xf32>
    %349 = tpu.matmul %331, %7, %cst_127 {dimension_numbers = #tpu.dot_dimension_numbers<[1], [0], [0], [1], [0, 0, 1, 1], [], []>} : vector<2x32xf32>, vector<32x32xf32>, vector<2x32xf32> -> vector<2x32xf32>
    %350 = arith.addf %348, %349 : vector<2x32xf32>
    %cst_128 = arith.constant 5.000000e-01 : f32
    %351 = vector.broadcast %cst_128 : f32 to vector<2x32xf32>
    %352 = arith.mulf %351, %338 : vector<2x32xf32>
    %353 = math.tanh %352 : vector<2x32xf32>
    %cst_129 = arith.constant 5.000000e-01 : f32
    %354 = vector.broadcast %cst_129 : f32 to vector<2x32xf32>
    %355 = arith.mulf %354, %353 : vector<2x32xf32>
    %cst_130 = arith.constant 5.000000e-01 : f32
    %356 = vector.broadcast %cst_130 : f32 to vector<2x32xf32>
    %357 = arith.addf %355, %356 : vector<2x32xf32>
    %cst_131 = arith.constant 5.000000e-01 : f32
    %358 = vector.broadcast %cst_131 : f32 to vector<2x32xf32>
    %359 = arith.mulf %358, %342 : vector<2x32xf32>
    %360 = math.tanh %359 : vector<2x32xf32>
    %cst_132 = arith.constant 5.000000e-01 : f32
    %361 = vector.broadcast %cst_132 : f32 to vector<2x32xf32>
    %362 = arith.mulf %361, %360 : vector<2x32xf32>
    %cst_133 = arith.constant 5.000000e-01 : f32
    %363 = vector.broadcast %cst_133 : f32 to vector<2x32xf32>
    %364 = arith.addf %362, %363 : vector<2x32xf32>
    %365 = math.tanh %346 : vector<2x32xf32>
    %cst_134 = arith.constant 5.000000e-01 : f32
    %366 = vector.broadcast %cst_134 : f32 to vector<2x32xf32>
    %367 = arith.mulf %366, %350 : vector<2x32xf32>
    %368 = math.tanh %367 : vector<2x32xf32>
    %cst_135 = arith.constant 5.000000e-01 : f32
    %369 = vector.broadcast %cst_135 : f32 to vector<2x32xf32>
    %370 = arith.mulf %369, %368 : vector<2x32xf32>
    %cst_136 = arith.constant 5.000000e-01 : f32
    %371 = vector.broadcast %cst_136 : f32 to vector<2x32xf32>
    %372 = arith.addf %370, %371 : vector<2x32xf32>
    %373 = arith.mulf %364, %329 : vector<2x32xf32>
    %374 = arith.mulf %357, %365 : vector<2x32xf32>
    %375 = arith.addf %373, %374 : vector<2x32xf32>
    %376 = math.tanh %375 : vector<2x32xf32>
    %377 = arith.mulf %372, %376 : vector<2x32xf32>
    %c8_i32 = arith.constant 8 : i32
    %c0_137 = arith.constant 0 : index
    %c0_138 = arith.constant 0 : index
    %378 = vector.load %arg3[%c0_137, %c0_138] : memref<2x32xf32, #tpu.memory_space<vmem>>, vector<2x32xf32>
    tpu.vector_store %arg3[%c0_137, %c0_138], %377 {strides = array<i32>} : memref<2x32xf32, #tpu.memory_space<vmem>>, vector<2x32xf32>,
    return
  }
  func.func @transform_0(%arg0: i32) -> (i32, i32, i32, i32) {
    %c0_i32 = arith.constant 0 : i32
    %c0_i32_0 = arith.constant 0 : i32
    %c0_i32_1 = arith.constant 0 : i32
    %c0_i32_2 = arith.constant 0 : i32
    return %c0_i32, %c0_i32_0, %arg0, %c0_i32_1 : i32, i32, i32, i32
  }
  func.func @transform_1(%arg0: i32) -> (i32, i32, i32) {
    %c0_i32 = arith.constant 0 : i32
    %c0_i32_0 = arith.constant 0 : i32
    %c0_i32_1 = arith.constant 0 : i32
    %c0_i32_2 = arith.constant 0 : i32
    return %c0_i32, %c0_i32_0, %c0_i32_1 : i32, i32, i32
  }
  func.func @transform_2(%arg0: i32) -> (i32, i32) {
    %c0_i32 = arith.constant 0 : i32
    %c0_i32_0 = arith.constant 0 : i32
    return %arg0, %c0_i32 : i32, i32
  }
}

</mosaic_0001>

<bundles_post_ra>
// kernel: tpu_custom_call.1
= control target key start
LH: loop header
LB: loop body
LE: loop exit
PB: predicated region body
PF: predicated region fallthrough
CT: control target
= control target key end

     0   :  { %7 = vsyncpa [#allocation3], 0  ;;  %s3752_s0 = inlined_call_operand.hbm [shape: f32[8,4,2,32], index: 0, kind: input, shape index: {}]   ;;  %s3753_s1 = inlined_call_operand.hbm [shape: f32[4,32,32], index: 1, kind: input, shape index: {}]   ;;  %s3754_s2 = inlined_call_operand.hbm [shape: f32[2,32], index: 2, kind: output, shape index: {}]  }
   0x1   :  { %8 = vsyncpa [#allocation6], 0 }
   0x2   :  { %9 = vsyncpa [#allocation4], 0  ;;  %s3451_s9 = smov [#allocation2]   ;;  %s3379_s13 = scalar_lea.hbm %s3752_s0, 1024 }
   0x3   :  { %s15_s10 = sshll.u32 %s3451_s9, 4  ;;  %p3380_p0 = scmp.ne.s32.totalorder %s3752_s0, %s3379_s13  ;;  %s16_s10 = int_to_ptr.vmem [resolvable:$true] %s15_s10 }
   0x4   :  { %p3383_p1 = scmp.lt.u32.totalorder %s3379_s13, %s3752_s0 }
   0x6   :  { %p3385_p2 = pnand %p3383_p1, %p3380_p0 }
   0x8   :  { %3388 = shalt.err (!%p3385_p2)
}
   0x9   :  { %s3389_s18 = scalar_lea.vmem %s16_s10, 1024  ;;  %p3394_p4 = scmp.lt.s32.totalorder %s16_s10, %s16_s10 }
   0xa   :  { %p3390_p3 = scmp.ne.s32.totalorder %s16_s10, %s3389_s18  ;;  %p3395_p5 = scmp.lt.s32.totalorder %s3389_s18, %s3389_s18 }
   0xc   :  { %p3396_p6 = por %p3395_p5, %p3394_p4 }
   0xe   :  { %p3397_p7 = pnand %p3396_p6, %p3390_p3 }
  0x10   :  { %3400 = shalt.err (!%p3397_p7)
}
  0x11   :  { %s3452_s19 = smov 32   ;;  %s3453_s20 = smov 2  }
  0x12   :  { %21 = dma.hbm_to_vmem [thread:$0]  %s3752_s0, 1024, %s16_s10, [#allocation3], %s3452_s19, %s3452_s19, %s3453_s20  }
  0x13   :  { %s3454_s23 = smov [#allocation5]   ;;  %s3401_s27 = scalar_lea.hbm %s3753_s1, 2048 }
  0x14   :  { %s27_s24 = sshll.u32 %s3454_s23, 4  ;;  %p3402_p8 = scmp.ne.s32.totalorder %s3753_s1, %s3401_s27  ;;  %s28_s24 = int_to_ptr.vmem [resolvable:$true] %s27_s24 }
  0x15   :  { %p3405_p9 = scmp.lt.u32.totalorder %s3401_s27, %s3753_s1 }
  0x17   :  { %p3407_p10 = pnand %p3405_p9, %p3402_p8 }
  0x19   :  { %3410 = shalt.err (!%p3407_p10)
}
  0x1a   :  { %s3411_s4 = scalar_lea.vmem %s28_s24, 2048  ;;  %p3416_p12 = scmp.lt.s32.totalorder %s28_s24, %s28_s24 }
  0x1b   :  { %p3412_p11 = scmp.ne.s32.totalorder %s28_s24, %s3411_s4  ;;  %p3417_p13 = scmp.lt.s32.totalorder %s3411_s4, %s3411_s4 }
  0x1d   :  { %p3418_p0 = por %p3417_p13, %p3416_p12 }
  0x1f   :  { %p3419_p1 = pnand %p3418_p0, %p3412_p11 }
  0x21   :  { %3422 = shalt.err (!%p3419_p1)
}
  0x22   :  { %s3455_s0 = smov 128   ;;  %s3456_s5 = smov 8  }
  0x23   :  { %33 = dma.hbm_to_vmem [thread:$0]  %s3753_s1, 2048, %s28_s24, [#allocation6], %s3455_s0, %s3455_s0, %s3456_s5  }
  0x24   :  { %3445 = dma.done.wait [#allocation3], 1024  }
  0x25   :  { %3446 = vsyncadd [#allocation3], 4294966272 }
  0x26   :  { %3447 = dma.done.wait [#allocation6], 2048  }
  0x27   :  { %3448 = vsyncadd [#allocation6], 4294965248  ;;  %v3457_v0 = vmov 0.0|0.0   ;;  %vm3458_vm0 = vmmov 0   ;;  %v3459_v1 = vmov 0.0   ;;  %v40_v2 = vld [vmem:[#allocation5] sm:$0xff] }
  0x28   :  { %3097 = vmatprep.subr.bf16.mxu0 %v3457_v0  ;;  %3103 = vmatprep.subr.bf16.mxu1 %v3457_v0  ;;  %v41_v3 = vld [vmem:[#allocation5 + $0x8] sm:$0xff]  ;;  %v45_v4 = vld [vmem:[#allocation5 + $0x20] sm:$0xff]  ;;  %v42_v7 = vld [vmem:[#allocation5 + $0x10] sm:$0xff]  ;;  %vm63_vm1 = vcmask 261120   ;;  %s3460_s1 = smov [#allocation7]   ;;  %vm2539_vm2 = vcmask 254976  }
  0x29   :  { %2753 = vmatprep.mubr.msk.f32.mxu0 %vm3458_vm0, %v3459_v1  ;;  %2764 = vmatprep.mubr.msk.f32.mxu1 %vm3458_vm0, %v3459_v1  ;;  %v3506_v5 = vpack.c.bf16 %v41_v3, %v40_v2  ;;  %v46_v6 = vld [vmem:[#allocation5 + $0x28] sm:$0xff]  ;;  %v43_v8 = vld [vmem:[#allocation5 + $0x18] sm:$0xff]  ;;  %v47_v10 = vld [vmem:[#allocation5 + $0x30] sm:$0xff]  ;;  %s2547_s8 = sshll.u32 %s3460_s1, 4  ;;  %s2548_s8 = int_to_ptr.vmem [resolvable:$true] %s2547_s8 }
  0x2a   :  { %v3508_v9 = vpack.c.bf16 %v46_v6, %v45_v4  ;;  %v48_v11 = vld [vmem:[#allocation5 + $0x38] sm:$0xff]  ;;  %v3511_v12 = vpack.c.bf16 %v43_v8, %v42_v7  ;;  %v50_v14 = vld [vmem:[#allocation5 + $0x40] sm:$0xff]  ;;  %v51_v15 = vld [vmem:[#allocation5 + $0x48] sm:$0xff]  ;;  %s3423_s9 = scalar_lea.vmem %s2548_s8, 32  ;;  %p3428_p3 = scmp.lt.s32.totalorder %s2548_s8, %s2548_s8 }
  0x2b   :  { %3099 = vmatpush3.bf16.msra.mxu0 %v3506_v5  ;;  %v3515_v13 = vpack.c.bf16 %v48_v11, %v47_v10  ;;  %v55_v16 = vld [vmem:[#allocation5 + $0x60] sm:$0xff]  ;;  %v56_v17 = vld [vmem:[#allocation5 + $0x68] sm:$0xff]  ;;  %v3519_v18 = vpack.c.bf16 %v51_v15, %v50_v14  ;;  %v52_v19 = vld [vmem:[#allocation5 + $0x50] sm:$0xff]  ;;  %p3424_p2 = scmp.ne.s32.totalorder %s2548_s8, %s3423_s9  ;;  %p3429_p4 = scmp.lt.s32.totalorder %s3423_s9, %s3423_s9 }
  0x2c   :  { %3105 = vmatpush3.bf16.msra.mxu1 %v3508_v9  ;;  %3100 = vmatprep.subr.bf16.mxu0 %v3457_v0  ;;  %v53_v20 = vld [vmem:[#allocation5 + $0x58] sm:$0xff]  ;;  %v3524_v21 = vpack.c.bf16 %v56_v17, %v55_v16  ;;  %v57_v22 = vld [vmem:[#allocation5 + $0x70] sm:$0xff]  ;;  %v59_v26 = vld [vmem:[#allocation2] sm:$0x3] }
  0x2d   :  { %3106 = vmatprep.subr.bf16.mxu1 %v3457_v0  ;;  %v58_v23 = vld [vmem:[#allocation5 + $0x78] sm:$0xff]  ;;  %v3529_v24 = vpack.c.bf16 %v53_v20, %v52_v19  ;;  %v60_v27 = vld [vmem:[#allocation2 + $0x2] sm:$0x3]  ;;  %v61_v36 = vld [vmem:[#allocation2 + $0x4] sm:$0x3]  ;;  %p3430_p5 = por %p3429_p4, %p3428_p3 }
  0x2e   :  { %v3535_v25 = vpack.c.bf16 %v58_v23, %v57_v22  ;;  %v62_v38 = vld [vmem:[#allocation2 + $0x6] sm:$0x3]  ;;  %v370_v60 = vld [vmem:[#allocation2 + $0x8] sm:$0x3]  ;;  %v371_v61 = vld [vmem:[#allocation2 + $0xa] sm:$0x3] }
  0x2f   :  { %3102 = vmatpush3.bf16.msra.mxu0 %v3511_v12  ;;  %v372_v10 = vld [vmem:[#allocation2 + $0xc] sm:$0x3]  ;;  %v373_v11 = vld [vmem:[#allocation2 + $0xe] sm:$0x3]  ;;  %p3431_p6 = pnand %p3430_p5, %p3424_p2 }
  0x30   :  { %3108 = vmatpush3.bf16.msra.mxu1 %v3515_v13  ;;  %3109 = vmatprep.subr.bf16.mxu0 %v3457_v0 }
  0x31   :  { %3115 = vmatprep.subr.bf16.mxu1 %v3457_v0 }
  0x32   :  { %2754 = vmatmul.mubr.f32.vlgmr.msra.gmra.mrb[0].mxu0 %v3459_v1 }
  0x33   :  { %2765 = vmatmul.mubr.f32.vlgmr.msra.gmra.mrb[0].mxu1 %v3459_v1  ;;  %3111 = vmatpush3.bf16.msra.mxu0 %v3519_v18 }
  0x34   :  { %3112 = vmatprep.subr.bf16.mxu0 %v3457_v0  ;;  %2775 = vmatprep.mubr.msk.f32.mxu0 %vm3458_vm0, %v3459_v1 }
  0x35   :  { %3117 = vmatpush3.bf16.msra.mxu1 %v3524_v21  ;;  %2786 = vmatprep.mubr.msk.f32.mxu1 %vm3458_vm0, %v3459_v1 }
  0x36   :  { %3118 = vmatprep.subr.bf16.mxu1 %v3457_v0 }
  0x37   :  { %3114 = vmatpush3.bf16.msra.mxu0 %v3529_v24 }
  0x38   :  { %3121 = vmatprep.subr.bf16.mxu0 %v3457_v0 }
  0x39   :  { %3120 = vmatpush3.bf16.msra.mxu1 %v3535_v25 }
  0x3a   :  { %2776 = vmatmul.mubr.f32.vlgmr.msra.gmra.mrb[2].mxu0 %v3459_v1  ;;  %3127 = vmatprep.subr.bf16.mxu1 %v3457_v0 }
  0x3b   :  { %3123 = vmatpush3.bf16.msra.mxu0 %v3506_v5  ;;  %2797 = vmatprep.mubr.msk.f32.mxu0 %vm3458_vm0, %v3459_v1 }
  0x3c   :  { %2787 = vmatmul.mubr.f32.vlgmr.msra.gmra.mrb[2].mxu1 %v3459_v1  ;;  %3124 = vmatprep.subr.bf16.mxu0 %v3457_v0 }
  0x3d   :  { %3129 = vmatpush3.bf16.msra.mxu1 %v3508_v9  ;;  %2808 = vmatprep.mubr.msk.f32.mxu1 %vm3458_vm0, %v3459_v1 }
  0x3e   :  { %3130 = vmatprep.subr.bf16.mxu1 %v3457_v0 }
  0x3f   :  { %3126 = vmatpush3.bf16.msra.mxu0 %v3511_v12 }
  0x40   :  { %3133 = vmatprep.subr.bf16.mxu0 %v3457_v0 }
  0x41   :  { %3132 = vmatpush3.bf16.msra.mxu1 %v3515_v13 }
  0x42   :  { %3139 = vmatprep.subr.bf16.mxu1 %v3457_v0 }
 0x105   :  { %v133_v28 = vpop.f32.mrb[0].mxu0 }
 0x106   :  { %v137_v29 = vadd.f32 %v133_v28, %v59_v26  ;;  %v2755_v30 = vpop.f32.mrb[1].mxu0  ;;  %v204_v31 = vpop.f32.mrb[0].mxu1 }
 0x107   :  { %v208_v32 = vadd.f32 %v204_v31, %v60_v27  ;;  %v2766_v33 = vpop.f32.mrb[1].mxu1 }
 0x108   :  { %v351_v34 = vmul.f32 0.5, %v137_v29 }
 0x109   :  { %v355_v35 = vmul.f32 0.5, %v208_v32 }
 0x10a   :  { %3299 = vtanh.f32 %v351_v34 }
 0x10b   :  { %3301 = vtanh.f32 %v355_v35 }
 0x10d   :  { %v275_v37 = vpop.f32.mrb[2].mxu0 }
 0x10e   :  { %v279_v39 = vadd.f32 %v275_v37, %v61_v36  ;;  %v2777_v40 = vpop.f32.mrb[3].mxu0 }
 0x10f   :  { %v346_v41 = vpop.f32.mrb[2].mxu1  ;;  %v680_v40 = vld [vmem:[#allocation2 + $0x10] sm:$0x3] }
 0x110   :  { %3303 = vtanh.f32 %v279_v39  ;;  %v350_v42 = vadd.f32 %v346_v41, %v62_v38  ;;  %v2788_v43 = vpop.f32.mrb[3].mxu1  ;;  %v681_v41 = vld [vmem:[#allocation2 + $0x12] sm:$0x3] }
 0x112   :  { %v360_v44 = vmul.f32 0.5, %v350_v42 }
 0x114   :  { %v3300_v45 = vpop.eup %3299  ;;  %3305 = vtanh.f32 %v360_v44 }
 0x115   :  { %v3302_v46 = vpop.eup %3301  ;;  %v353_v47 = vmul.f32 0.5, %v3300_v45 }
 0x116   :  { %v357_v48 = vmul.f32 0.5, %v3302_v46 }
 0x117   :  { %v354_v49 = vadd.f32 0.5, %v353_v47 }
 0x118   :  { %v358_v50 = vadd.f32 0.5, %v357_v48 }
 0x11a   :  { %v3304_v51 = vpop.eup %3303  ;;  %v364_v52 = vmul.f32 0.0, %v358_v50  ;;  %v682_v50 = vld [vmem:[#allocation2 + $0x14] sm:$0x3] }
 0x11b   :  { %v365_v53 = vmul.f32 %v3304_v51, %v354_v49  ;;  %v683_v51 = vld [vmem:[#allocation2 + $0x16] sm:$0x3] }
 0x11d   :  { %v366_v54 = vadd.f32 %v365_v53, %v364_v52 }
 0x11e   :  { %v3306_v55 = vpop.eup %3305 }
 0x11f   :  { %3307 = vtanh.f32 %v366_v54  ;;  %v362_v56 = vmul.f32 0.5, %v3306_v55 }
 0x121   :  { %v363_v57 = vadd.f32 0.5, %v362_v56 }
 0x129   :  { %v3308_v58 = vpop.eup %3307 }
 0x12a   :  { %v368_v59 = vmul.f32 %v3308_v58, %v363_v57 }
 0x12c   :  { %2798 = vmatmul.mubr.msk.f32.vlgmr.msra.gmra.mrb[4].mxu0 %vm63_vm1, %v368_v59  ;;  %2809 = vmatmul.mubr.msk.f32.vlgmr.msra.gmra.mrb[4].mxu1 %vm63_vm1, %v368_v59 }
 0x12d   :  { %3135 = vmatpush3.bf16.msra.mxu0 %v3519_v18  ;;  %3141 = vmatpush3.bf16.msra.mxu1 %v3524_v21 }
 0x12e   :  { %3136 = vmatprep.subr.bf16.mxu0 %v3457_v0  ;;  %3142 = vmatprep.subr.bf16.mxu1 %v3457_v0 }
 0x12f   :  { %2819 = vmatprep.mubr.msk.f32.mxu0 %vm3458_vm0, %v3459_v1  ;;  %2830 = vmatprep.mubr.msk.f32.mxu1 %vm3458_vm0, %v3459_v1 }
 0x131   :  { %3138 = vmatpush3.bf16.msra.mxu0 %v3529_v24  ;;  %3144 = vmatpush3.bf16.msra.mxu1 %v3535_v25 }
 0x132   :  { %3145 = vmatprep.subr.bf16.mxu0 %v3457_v0  ;;  %3151 = vmatprep.subr.bf16.mxu1 %v3457_v0 }
 0x134   :  { %2820 = vmatmul.mubr.msk.f32.vlgmr.msra.gmra.mrb[6].mxu0 %vm63_vm1, %v368_v59  ;;  %2831 = vmatmul.mubr.msk.f32.vlgmr.msra.gmra.mrb[6].mxu1 %vm63_vm1, %v368_v59 }
 0x135   :  { %3147 = vmatpush3.bf16.msra.mxu0 %v3506_v5  ;;  %3153 = vmatpush3.bf16.msra.mxu1 %v3508_v9 }
 0x136   :  { %3148 = vmatprep.subr.bf16.mxu0 %v3457_v0  ;;  %3154 = vmatprep.subr.bf16.mxu1 %v3457_v0 }
 0x137   :  { %2841 = vmatprep.mubr.msk.f32.mxu0 %vm3458_vm0, %v3459_v1  ;;  %2852 = vmatprep.mubr.msk.f32.mxu1 %vm3458_vm0, %v3459_v1 }
 0x139   :  { %3150 = vmatpush3.bf16.msra.mxu0 %v3511_v12  ;;  %3156 = vmatpush3.bf16.msra.mxu1 %v3515_v13 }
 0x13a   :  { %3157 = vmatprep.subr.bf16.mxu0 %v3457_v0  ;;  %3163 = vmatprep.subr.bf16.mxu1 %v3457_v0 }
 0x1ff   :  { %v443_v62 = vpop.f32.mrb[4].mxu0  ;;  %v514_v63 = vpop.f32.mrb[4].mxu1 }
 0x200   :  { %v447_v2 = vadd.f32 %v443_v62, %v370_v60  ;;  %v518_v3 = vadd.f32 %v514_v63, %v371_v61  ;;  %v2799_v4 = vpop.f32.mrb[5].mxu0  ;;  %v2810_v6 = vpop.f32.mrb[5].mxu1 }
 0x202   :  { %v661_v7 = vmul.f32 0.5, %v447_v2  ;;  %v665_v8 = vmul.f32 0.5, %v518_v3 }
 0x204   :  { %3309 = vtanh.f32 %v661_v7 }
 0x205   :  { %3311 = vtanh.f32 %v665_v8 }
 0x207   :  { %v585_v14 = vpop.f32.mrb[6].mxu0  ;;  %v656_v15 = vpop.f32.mrb[6].mxu1 }
 0x208   :  { %v589_v16 = vadd.f32 %v585_v14, %v372_v10  ;;  %v2821_v17 = vpop.f32.mrb[7].mxu0  ;;  %v2832_v19 = vpop.f32.mrb[7].mxu1  ;;  %v660_v20 = vadd.f32 %v656_v15, %v373_v11 }
 0x209   :  { %v991_v17 = vld [vmem:[#allocation2 + $0x1a] sm:$0x3] }
 0x20a   :  { %3313 = vtanh.f32 %v589_v16  ;;  %v670_v22 = vmul.f32 0.5, %v660_v20  ;;  %v990_v16 = vld [vmem:[#allocation2 + $0x18] sm:$0x3] }
 0x20c   :  { %3315 = vtanh.f32 %v670_v22 }
 0x20e   :  { %v3310_v23 = vpop.eup %3309 }
 0x20f   :  { %v3312_v26 = vpop.eup %3311  ;;  %v663_v27 = vmul.f32 0.5, %v3310_v23 }
 0x210   :  { %v667_v28 = vmul.f32 0.5, %v3312_v26 }
 0x211   :  { %v664_v29 = vadd.f32 0.5, %v663_v27 }
 0x212   :  { %v668_v30 = vadd.f32 0.5, %v667_v28 }
 0x214   :  { %v3314_v31 = vpop.eup %3313  ;;  %v674_v32 = vmul.f32 %v668_v30, %v366_v54  ;;  %v992_v30 = vld [vmem:[#allocation2 + $0x1c] sm:$0x3] }
 0x215   :  { %v675_v33 = vmul.f32 %v3314_v31, %v664_v29  ;;  %v993_v31 = vld [vmem:[#allocation2 + $0x1e] sm:$0x3] }
 0x216   :  { %v3316_v35 = vpop.eup %3315 }
 0x217   :  { %v676_v34 = vadd.f32 %v675_v33, %v674_v32  ;;  %v672_v36 = vmul.f32 0.5, %v3316_v35 }
 0x219   :  { %3317 = vtanh.f32 %v676_v34  ;;  %v673_v37 = vadd.f32 0.5, %v672_v36 }
 0x223   :  { %v3318_v38 = vpop.eup %3317 }
 0x224   :  { %v678_v39 = vmul.f32 %v3318_v38, %v673_v37 }
 0x226   :  { %2842 = vmatmul.mubr.msk.f32.vlgmr.msra.gmra.mrb[8].mxu0 %vm63_vm1, %v678_v39  ;;  %2853 = vmatmul.mubr.msk.f32.vlgmr.msra.gmra.mrb[8].mxu1 %vm63_vm1, %v678_v39 }
 0x227   :  { %3159 = vmatpush3.bf16.msra.mxu0 %v3519_v18  ;;  %3165 = vmatpush3.bf16.msra.mxu1 %v3524_v21 }
 0x228   :  { %3160 = vmatprep.subr.bf16.mxu0 %v3457_v0  ;;  %3166 = vmatprep.subr.bf16.mxu1 %v3457_v0 }
 0x229   :  { %2863 = vmatprep.mubr.msk.f32.mxu0 %vm3458_vm0, %v3459_v1  ;;  %2874 = vmatprep.mubr.msk.f32.mxu1 %vm3458_vm0, %v3459_v1 }
 0x22b   :  { %3162 = vmatpush3.bf16.msra.mxu0 %v3529_v24  ;;  %3168 = vmatpush3.bf16.msra.mxu1 %v3535_v25 }
 0x22c   :  { %3169 = vmatprep.subr.bf16.mxu0 %v3457_v0  ;;  %3175 = vmatprep.subr.bf16.mxu1 %v3457_v0 }
 0x22e   :  { %2864 = vmatmul.mubr.msk.f32.vlgmr.msra.gmra.mrb[10].mxu0 %vm63_vm1, %v678_v39  ;;  %2875 = vmatmul.mubr.msk.f32.vlgmr.msra.gmra.mrb[10].mxu1 %vm63_vm1, %v678_v39 }
 0x22f   :  { %3171 = vmatpush3.bf16.msra.mxu0 %v3506_v5  ;;  %3177 = vmatpush3.bf16.msra.mxu1 %v3508_v9 }
 0x230   :  { %3172 = vmatprep.subr.bf16.mxu0 %v3457_v0  ;;  %3178 = vmatprep.subr.bf16.mxu1 %v3457_v0 }
 0x231   :  { %2885 = vmatprep.mubr.msk.f32.mxu0 %vm3458_vm0, %v3459_v1  ;;  %2896 = vmatprep.mubr.msk.f32.mxu1 %vm3458_vm0, %v3459_v1 }
 0x233   :  { %3174 = vmatpush3.bf16.msra.mxu0 %v3511_v12  ;;  %3180 = vmatpush3.bf16.msra.mxu1 %v3515_v13 }
 0x234   :  { %3181 = vmatprep.subr.bf16.mxu0 %v3457_v0  ;;  %3187 = vmatprep.subr.bf16.mxu1 %v3457_v0 }
 0x2f9   :  { %v753_v42 = vpop.f32.mrb[8].mxu0  ;;  %v824_v43 = vpop.f32.mrb[8].mxu1 }
 0x2fa   :  { %v757_v44 = vadd.f32 %v753_v42, %v680_v40  ;;  %v828_v45 = vadd.f32 %v824_v43, %v681_v41  ;;  %v2843_v46 = vpop.f32.mrb[9].mxu0  ;;  %v2854_v47 = vpop.f32.mrb[9].mxu1 }
 0x2fc   :  { %v971_v48 = vmul.f32 0.5, %v757_v44  ;;  %v975_v49 = vmul.f32 0.5, %v828_v45 }
 0x2fe   :  { %3319 = vtanh.f32 %v971_v48 }
 0x2ff   :  { %3321 = vtanh.f32 %v975_v49 }
 0x301   :  { %v895_v52 = vpop.f32.mrb[10].mxu0  ;;  %v966_v53 = vpop.f32.mrb[10].mxu1 }
 0x302   :  { %v899_v54 = vadd.f32 %v895_v52, %v682_v50  ;;  %v2865_v55 = vpop.f32.mrb[11].mxu0  ;;  %v2876_v56 = vpop.f32.mrb[11].mxu1  ;;  %v970_v57 = vadd.f32 %v966_v53, %v683_v51 }
 0x303   :  { %v1301_v55 = vld [vmem:[#allocation2 + $0x22] sm:$0x3] }
 0x304   :  { %3323 = vtanh.f32 %v899_v54  ;;  %v980_v58 = vmul.f32 0.5, %v970_v57  ;;  %v1300_v54 = vld [vmem:[#allocation2 + $0x20] sm:$0x3] }
 0x306   :  { %3325 = vtanh.f32 %v980_v58 }
 0x308   :  { %v3320_v59 = vpop.eup %3319 }
 0x309   :  { %v3322_v60 = vpop.eup %3321  ;;  %v973_v61 = vmul.f32 0.5, %v3320_v59 }
 0x30a   :  { %v977_v62 = vmul.f32 0.5, %v3322_v60 }
 0x30b   :  { %v974_v63 = vadd.f32 0.5, %v973_v61 }
 0x30c   :  { %v978_v2 = vadd.f32 0.5, %v977_v62 }
 0x30e   :  { %v3324_v3 = vpop.eup %3323  ;;  %v984_v4 = vmul.f32 %v978_v2, %v676_v34  ;;  %v1302_v2 = vld [vmem:[#allocation2 + $0x24] sm:$0x3] }
 0x30f   :  { %v985_v6 = vmul.f32 %v3324_v3, %v974_v63  ;;  %v1303_v3 = vld [vmem:[#allocation2 + $0x26] sm:$0x3] }
 0x310   :  { %v3326_v8 = vpop.eup %3325 }
 0x311   :  { %v986_v7 = vadd.f32 %v985_v6, %v984_v4  ;;  %v982_v10 = vmul.f32 0.5, %v3326_v8 }
 0x313   :  { %3327 = vtanh.f32 %v986_v7  ;;  %v983_v11 = vadd.f32 0.5, %v982_v10 }
 0x31d   :  { %v3328_v14 = vpop.eup %3327 }
 0x31e   :  { %v988_v15 = vmul.f32 %v3328_v14, %v983_v11 }
 0x320   :  { %2886 = vmatmul.mubr.msk.f32.vlgmr.msra.gmra.mrb[12].mxu0 %vm63_vm1, %v988_v15  ;;  %2897 = vmatmul.mubr.msk.f32.vlgmr.msra.gmra.mrb[12].mxu1 %vm63_vm1, %v988_v15 }
 0x321   :  { %3183 = vmatpush3.bf16.msra.mxu0 %v3519_v18  ;;  %3189 = vmatpush3.bf16.msra.mxu1 %v3524_v21 }
 0x322   :  { %3184 = vmatprep.subr.bf16.mxu0 %v3457_v0  ;;  %3190 = vmatprep.subr.bf16.mxu1 %v3457_v0 }
 0x323   :  { %2907 = vmatprep.mubr.msk.f32.mxu0 %vm3458_vm0, %v3459_v1  ;;  %2918 = vmatprep.mubr.msk.f32.mxu1 %vm3458_vm0, %v3459_v1 }
 0x325   :  { %3186 = vmatpush3.bf16.msra.mxu0 %v3529_v24  ;;  %3192 = vmatpush3.bf16.msra.mxu1 %v3535_v25 }
 0x326   :  { %3193 = vmatprep.subr.bf16.mxu0 %v3457_v0  ;;  %3199 = vmatprep.subr.bf16.mxu1 %v3457_v0 }
 0x328   :  { %2908 = vmatmul.mubr.msk.f32.vlgmr.msra.gmra.mrb[14].mxu0 %vm63_vm1, %v988_v15  ;;  %2919 = vmatmul.mubr.msk.f32.vlgmr.msra.gmra.mrb[14].mxu1 %vm63_vm1, %v988_v15 }
 0x329   :  { %3195 = vmatpush3.bf16.msra.mxu0 %v3506_v5  ;;  %3201 = vmatpush3.bf16.msra.mxu1 %v3508_v9 }
 0x32a   :  { %3196 = vmatprep.subr.bf16.mxu0 %v3457_v0  ;;  %3202 = vmatprep.subr.bf16.mxu1 %v3457_v0 }
 0x32b   :  { %2929 = vmatprep.mubr.msk.f32.mxu0 %vm3458_vm0, %v3459_v1  ;;  %2940 = vmatprep.mubr.msk.f32.mxu1 %vm3458_vm0, %v3459_v1 }
 0x32d   :  { %3198 = vmatpush3.bf16.msra.mxu0 %v3511_v12  ;;  %3204 = vmatpush3.bf16.msra.mxu1 %v3515_v13 }
 0x32e   :  { %3205 = vmatprep.subr.bf16.mxu0 %v3457_v0  ;;  %3211 = vmatprep.subr.bf16.mxu1 %v3457_v0 }
 0x3f3   :  { %v1063_v19 = vpop.f32.mrb[12].mxu0  ;;  %v1134_v20 = vpop.f32.mrb[12].mxu1 }
 0x3f4   :  { %v1067_v22 = vadd.f32 %v1063_v19, %v990_v16  ;;  %v1138_v23 = vadd.f32 %v1134_v20, %v991_v17  ;;  %v2887_v26 = vpop.f32.mrb[13].mxu0  ;;  %v2898_v27 = vpop.f32.mrb[13].mxu1 }
 0x3f6   :  { %v1281_v28 = vmul.f32 0.5, %v1067_v22  ;;  %v1285_v29 = vmul.f32 0.5, %v1138_v23 }
 0x3f8   :  { %3329 = vtanh.f32 %v1281_v28 }
 0x3f9   :  { %3331 = vtanh.f32 %v1285_v29 }
 0x3fb   :  { %v1205_v32 = vpop.f32.mrb[14].mxu0  ;;  %v1276_v33 = vpop.f32.mrb[14].mxu1 }
 0x3fc   :  { %v1209_v34 = vadd.f32 %v1205_v32, %v992_v30  ;;  %v2909_v35 = vpop.f32.mrb[15].mxu0  ;;  %v2920_v36 = vpop.f32.mrb[15].mxu1  ;;  %v1280_v37 = vadd.f32 %v1276_v33, %v993_v31 }
 0x3fd   :  { %v1611_v35 = vld [vmem:[#allocation2 + $0x2a] sm:$0x3] }
 0x3fe   :  { %3333 = vtanh.f32 %v1209_v34  ;;  %v1290_v38 = vmul.f32 0.5, %v1280_v37  ;;  %v1610_v34 = vld [vmem:[#allocation2 + $0x28] sm:$0x3] }
 0x400   :  { %3335 = vtanh.f32 %v1290_v38 }
 0x402   :  { %v3330_v39 = vpop.eup %3329 }
 0x403   :  { %v3332_v40 = vpop.eup %3331  ;;  %v1283_v41 = vmul.f32 0.5, %v3330_v39 }
 0x404   :  { %v1287_v42 = vmul.f32 0.5, %v3332_v40 }
 0x405   :  { %v1284_v43 = vadd.f32 0.5, %v1283_v41 }
 0x406   :  { %v1288_v44 = vadd.f32 0.5, %v1287_v42 }
 0x408   :  { %v3334_v45 = vpop.eup %3333  ;;  %v1294_v46 = vmul.f32 %v1288_v44, %v986_v7  ;;  %v1612_v44 = vld [vmem:[#allocation2 + $0x2c] sm:$0x3] }
 0x409   :  { %v1295_v47 = vmul.f32 %v3334_v45, %v1284_v43  ;;  %v1613_v45 = vld [vmem:[#allocation2 + $0x2e] sm:$0x3] }
 0x40a   :  { %v3336_v49 = vpop.eup %3335 }
 0x40b   :  { %v1296_v48 = vadd.f32 %v1295_v47, %v1294_v46  ;;  %v1292_v50 = vmul.f32 0.5, %v3336_v49 }
 0x40d   :  { %3337 = vtanh.f32 %v1296_v48  ;;  %v1293_v51 = vadd.f32 0.5, %v1292_v50 }
 0x417   :  { %v3338_v52 = vpop.eup %3337 }
 0x418   :  { %v1298_v53 = vmul.f32 %v3338_v52, %v1293_v51 }
 0x41a   :  { %2930 = vmatmul.mubr.msk.f32.vlgmr.msra.gmra.mrb[16].mxu0 %vm63_vm1, %v1298_v53  ;;  %2941 = vmatmul.mubr.msk.f32.vlgmr.msra.gmra.mrb[16].mxu1 %vm63_vm1, %v1298_v53 }
 0x41b   :  { %3207 = vmatpush3.bf16.msra.mxu0 %v3519_v18  ;;  %3213 = vmatpush3.bf16.msra.mxu1 %v3524_v21 }
 0x41c   :  { %3208 = vmatprep.subr.bf16.mxu0 %v3457_v0  ;;  %3214 = vmatprep.subr.bf16.mxu1 %v3457_v0 }
 0x41d   :  { %2951 = vmatprep.mubr.msk.f32.mxu0 %vm3458_vm0, %v3459_v1  ;;  %2962 = vmatprep.mubr.msk.f32.mxu1 %vm3458_vm0, %v3459_v1 }
 0x41f   :  { %3210 = vmatpush3.bf16.msra.mxu0 %v3529_v24  ;;  %3216 = vmatpush3.bf16.msra.mxu1 %v3535_v25 }
 0x420   :  { %3217 = vmatprep.subr.bf16.mxu0 %v3457_v0  ;;  %3223 = vmatprep.subr.bf16.mxu1 %v3457_v0 }
 0x422   :  { %2952 = vmatmul.mubr.msk.f32.vlgmr.msra.gmra.mrb[18].mxu0 %vm63_vm1, %v1298_v53  ;;  %2963 = vmatmul.mubr.msk.f32.vlgmr.msra.gmra.mrb[18].mxu1 %vm63_vm1, %v1298_v53 }
 0x423   :  { %3219 = vmatpush3.bf16.msra.mxu0 %v3506_v5  ;;  %3225 = vmatpush3.bf16.msra.mxu1 %v3508_v9 }
 0x424   :  { %3220 = vmatprep.subr.bf16.mxu0 %v3457_v0  ;;  %3226 = vmatprep.subr.bf16.mxu1 %v3457_v0 }
 0x425   :  { %2973 = vmatprep.mubr.msk.f32.mxu0 %vm3458_vm0, %v3459_v1  ;;  %2984 = vmatprep.mubr.msk.f32.mxu1 %vm3458_vm0, %v3459_v1 }
 0x427   :  { %3222 = vmatpush3.bf16.msra.mxu0 %v3511_v12  ;;  %3228 = vmatpush3.bf16.msra.mxu1 %v3515_v13 }
 0x428   :  { %3229 = vmatprep.subr.bf16.mxu0 %v3457_v0  ;;  %3235 = vmatprep.subr.bf16.mxu1 %v3457_v0 }
 0x4ed   :  { %v1373_v56 = vpop.f32.mrb[16].mxu0  ;;  %v1444_v57 = vpop.f32.mrb[16].mxu1 }
 0x4ee   :  { %v1377_v58 = vadd.f32 %v1373_v56, %v1300_v54  ;;  %v1448_v59 = vadd.f32 %v1444_v57, %v1301_v55  ;;  %v2931_v60 = vpop.f32.mrb[17].mxu0  ;;  %v2942_v61 = vpop.f32.mrb[17].mxu1 }
 0x4f0   :  { %v1591_v62 = vmul.f32 0.5, %v1377_v58  ;;  %v1595_v63 = vmul.f32 0.5, %v1448_v59 }
 0x4f2   :  { %3339 = vtanh.f32 %v1591_v62 }
 0x4f3   :  { %3341 = vtanh.f32 %v1595_v63 }
 0x4f5   :  { %v1515_v4 = vpop.f32.mrb[18].mxu0  ;;  %v1586_v6 = vpop.f32.mrb[18].mxu1 }
 0x4f6   :  { %v1519_v7 = vadd.f32 %v1515_v4, %v1302_v2  ;;  %v2953_v8 = vpop.f32.mrb[19].mxu0  ;;  %v2964_v10 = vpop.f32.mrb[19].mxu1  ;;  %v1590_v11 = vadd.f32 %v1586_v6, %v1303_v3 }
 0x4f8   :  { %3343 = vtanh.f32 %v1519_v7  ;;  %v1600_v14 = vmul.f32 0.5, %v1590_v11 }
 0x4fa   :  { %3345 = vtanh.f32 %v1600_v14 }
 0x4fc   :  { %v3340_v15 = vpop.eup %3339 }
 0x4fd   :  { %v3342_v16 = vpop.eup %3341  ;;  %v1593_v17 = vmul.f32 0.5, %v3340_v15 }
 0x4fe   :  { %v1597_v19 = vmul.f32 0.5, %v3342_v16 }
 0x4ff   :  { %v1594_v20 = vadd.f32 0.5, %v1593_v17 }
 0x500   :  { %v1598_v22 = vadd.f32 0.5, %v1597_v19  ;;  %v1922_v19 = vld [vmem:[#allocation2 + $0x34] sm:$0x3] }
 0x502   :  { %v3344_v23 = vpop.eup %3343  ;;  %v1604_v26 = vmul.f32 %v1598_v22, %v1296_v48 }
 0x503   :  { %v1605_v27 = vmul.f32 %v3344_v23, %v1594_v20 }
 0x504   :  { %v3346_v29 = vpop.eup %3345 }
 0x505   :  { %v1606_v28 = vadd.f32 %v1605_v27, %v1604_v26  ;;  %v1602_v30 = vmul.f32 0.5, %v3346_v29 }
 0x507   :  { %3347 = vtanh.f32 %v1606_v28  ;;  %v1603_v31 = vadd.f32 0.5, %v1602_v30 }
 0x511   :  { %v3348_v32 = vpop.eup %3347 }
 0x512   :  { %v1608_v33 = vmul.f32 %v3348_v32, %v1603_v31 }
 0x514   :  { %2974 = vmatmul.mubr.msk.f32.vlgmr.msra.gmra.mrb[20].mxu0 %vm63_vm1, %v1608_v33  ;;  %2985 = vmatmul.mubr.msk.f32.vlgmr.msra.gmra.mrb[20].mxu1 %vm63_vm1, %v1608_v33 }
 0x515   :  { %3231 = vmatpush3.bf16.msra.mxu0 %v3519_v18  ;;  %3237 = vmatpush3.bf16.msra.mxu1 %v3524_v21 }
 0x516   :  { %3232 = vmatprep.subr.bf16.mxu0 %v3457_v0  ;;  %3238 = vmatprep.subr.bf16.mxu1 %v3457_v0 }
 0x517   :  { %2995 = vmatprep.mubr.msk.f32.mxu0 %vm3458_vm0, %v3459_v1  ;;  %3006 = vmatprep.mubr.msk.f32.mxu1 %vm3458_vm0, %v3459_v1 }
 0x519   :  { %3234 = vmatpush3.bf16.msra.mxu0 %v3529_v24  ;;  %3240 = vmatpush3.bf16.msra.mxu1 %v3535_v25 }
 0x51a   :  { %3241 = vmatprep.subr.bf16.mxu0 %v3457_v0  ;;  %3247 = vmatprep.subr.bf16.mxu1 %v3457_v0 }
 0x51c   :  { %2996 = vmatmul.mubr.msk.f32.vlgmr.msra.gmra.mrb[22].mxu0 %vm63_vm1, %v1608_v33  ;;  %3007 = vmatmul.mubr.msk.f32.vlgmr.msra.gmra.mrb[22].mxu1 %vm63_vm1, %v1608_v33 }
 0x51d   :  { %3243 = vmatpush3.bf16.msra.mxu0 %v3506_v5  ;;  %3249 = vmatpush3.bf16.msra.mxu1 %v3508_v9 }
 0x51e   :  { %3244 = vmatprep.subr.bf16.mxu0 %v3457_v0  ;;  %3250 = vmatprep.subr.bf16.mxu1 %v3457_v0 }
 0x51f   :  { %3017 = vmatprep.mubr.msk.f32.mxu0 %vm3458_vm0, %v3459_v1  ;;  %3028 = vmatprep.mubr.msk.f32.mxu1 %vm3458_vm0, %v3459_v1 }
 0x521   :  { %3246 = vmatpush3.bf16.msra.mxu0 %v3511_v12  ;;  %3252 = vmatpush3.bf16.msra.mxu1 %v3515_v13 }
 0x522   :  { %3253 = vmatprep.subr.bf16.mxu0 %v3457_v0  ;;  %3259 = vmatprep.subr.bf16.mxu1 %v3457_v0 }
 0x5e7   :  { %v1683_v36 = vpop.f32.mrb[20].mxu0  ;;  %v1754_v37 = vpop.f32.mrb[20].mxu1 }
 0x5e8   :  { %v1687_v38 = vadd.f32 %v1683_v36, %v1610_v34  ;;  %v1758_v39 = vadd.f32 %v1754_v37, %v1611_v35  ;;  %v2975_v40 = vpop.f32.mrb[21].mxu0  ;;  %v2986_v41 = vpop.f32.mrb[21].mxu1 }
 0x5ea   :  { %v1901_v42 = vmul.f32 0.5, %v1687_v38  ;;  %v1905_v43 = vmul.f32 0.5, %v1758_v39 }
 0x5ec   :  { %3349 = vtanh.f32 %v1901_v42 }
 0x5ed   :  { %3351 = vtanh.f32 %v1905_v43 }
 0x5ef   :  { %v1825_v46 = vpop.f32.mrb[22].mxu0  ;;  %v1896_v47 = vpop.f32.mrb[22].mxu1 }
 0x5f0   :  { %v1829_v48 = vadd.f32 %v1825_v46, %v1612_v44  ;;  %v2997_v49 = vpop.f32.mrb[23].mxu0  ;;  %v3008_v50 = vpop.f32.mrb[23].mxu1  ;;  %v1900_v51 = vadd.f32 %v1896_v47, %v1613_v45 }
 0x5f2   :  { %3353 = vtanh.f32 %v1829_v48  ;;  %v1910_v52 = vmul.f32 0.5, %v1900_v51 }
 0x5f4   :  { %3355 = vtanh.f32 %v1910_v52 }
 0x5f6   :  { %v3350_v53 = vpop.eup %3349 }
 0x5f7   :  { %v3352_v54 = vpop.eup %3351  ;;  %v1903_v55 = vmul.f32 0.5, %v3350_v53 }
 0x5f8   :  { %v1907_v56 = vmul.f32 0.5, %v3352_v54 }
 0x5f9   :  { %v1904_v57 = vadd.f32 0.5, %v1903_v55 }
 0x5fa   :  { %v1908_v58 = vadd.f32 0.5, %v1907_v56 }
 0x5fc   :  { %v3354_v59 = vpop.eup %3353  ;;  %v1914_v60 = vmul.f32 %v1908_v58, %v1606_v28 }
 0x5fd   :  { %v1915_v61 = vmul.f32 %v3354_v59, %v1904_v57 }
 0x5fe   :  { %v3356_v63 = vpop.eup %3355 }
 0x5ff   :  { %v1916_v62 = vadd.f32 %v1915_v61, %v1914_v60  ;;  %v1912_v2 = vmul.f32 0.5, %v3356_v63 }
 0x601   :  { %3357 = vtanh.f32 %v1916_v62  ;;  %v1913_v3 = vadd.f32 0.5, %v1912_v2 }
 0x60b   :  { %v3358_v4 = vpop.eup %3357 }
 0x60c   :  { %v1918_v6 = vmul.f32 %v3358_v4, %v1913_v3 }
 0x60e   :  { %3018 = vmatmul.mubr.msk.f32.vlgmr.msra.gmra.mrb[24].mxu0 %vm63_vm1, %v1918_v6  ;;  %3029 = vmatmul.mubr.msk.f32.vlgmr.msra.gmra.mrb[24].mxu1 %vm63_vm1, %v1918_v6 }
 0x60f   :  { %3255 = vmatpush3.bf16.msra.mxu0 %v3519_v18  ;;  %3261 = vmatpush3.bf16.msra.mxu1 %v3524_v21 }
 0x610   :  { %3256 = vmatprep.subr.bf16.mxu0 %v3457_v0  ;;  %3262 = vmatprep.subr.bf16.mxu1 %v3457_v0 }
 0x611   :  { %3039 = vmatprep.mubr.msk.f32.mxu0 %vm3458_vm0, %v3459_v1  ;;  %3050 = vmatprep.mubr.msk.f32.mxu1 %vm3458_vm0, %v3459_v1 }
 0x613   :  { %3258 = vmatpush3.bf16.msra.mxu0 %v3529_v24  ;;  %3264 = vmatpush3.bf16.msra.mxu1 %v3535_v25 }
 0x614   :  { %3265 = vmatprep.subr.bf16.mxu0 %v3457_v0  ;;  %3271 = vmatprep.subr.bf16.mxu1 %v3457_v0 }
 0x616   :  { %3040 = vmatmul.mubr.msk.f32.vlgmr.msra.gmra.mrb[26].mxu0 %vm63_vm1, %v1918_v6  ;;  %3051 = vmatmul.mubr.msk.f32.vlgmr.msra.gmra.mrb[26].mxu1 %vm63_vm1, %v1918_v6 }
 0x617   :  { %3267 = vmatpush3.bf16.msra.mxu0 %v3506_v5  ;;  %3273 = vmatpush3.bf16.msra.mxu1 %v3508_v9  ;;  %v1920_v5 = vld [vmem:[#allocation2 + $0x30] sm:$0x3]  ;;  %v1921_v9 = vld [vmem:[#allocation2 + $0x32] sm:$0x3] }
 0x618   :  { %3268 = vmatprep.subr.bf16.mxu0 %v3457_v0  ;;  %3274 = vmatprep.subr.bf16.mxu1 %v3457_v0 }
 0x619   :  { %3061 = vmatprep.mubr.msk.f32.mxu0 %vm3458_vm0, %v3459_v1  ;;  %3072 = vmatprep.mubr.msk.f32.mxu1 %vm3458_vm0, %v3459_v1 }
 0x61b   :  { %3270 = vmatpush3.bf16.msra.mxu0 %v3511_v12  ;;  %3276 = vmatpush3.bf16.msra.mxu1 %v3515_v13  ;;  %v1923_v12 = vld [vmem:[#allocation2 + $0x36] sm:$0x3] }
 0x61c   :  { %3277 = vmatprep.subr.bf16.mxu0 %v3457_v0  ;;  %3283 = vmatprep.subr.bf16.mxu1 %v3457_v0 }
 0x6e1   :  { %v1993_v7 = vpop.f32.mrb[24].mxu0  ;;  %v2064_v8 = vpop.f32.mrb[24].mxu1 }
 0x6e2   :  { %v1997_v10 = vadd.f32 %v1993_v7, %v1920_v5  ;;  %v2068_v11 = vadd.f32 %v2064_v8, %v1921_v9  ;;  %v3019_v14 = vpop.f32.mrb[25].mxu0  ;;  %v3030_v15 = vpop.f32.mrb[25].mxu1 }
 0x6e4   :  { %v2211_v16 = vmul.f32 0.5, %v1997_v10  ;;  %v2215_v17 = vmul.f32 0.5, %v2068_v11 }
 0x6e6   :  { %3359 = vtanh.f32 %v2211_v16 }
 0x6e7   :  { %3361 = vtanh.f32 %v2215_v17 }
 0x6e9   :  { %v2135_v20 = vpop.f32.mrb[26].mxu0  ;;  %v2206_v13 = vpop.f32.mrb[26].mxu1 }
 0x6ea   :  { %v2139_v22 = vadd.f32 %v2135_v20, %v1922_v19  ;;  %v3041_v23 = vpop.f32.mrb[27].mxu0  ;;  %v3052_v26 = vpop.f32.mrb[27].mxu1  ;;  %v2210_v27 = vadd.f32 %v2206_v13, %v1923_v12 }
 0x6ec   :  { %3363 = vtanh.f32 %v2139_v22  ;;  %v2220_v28 = vmul.f32 0.5, %v2210_v27 }
 0x6ee   :  { %3365 = vtanh.f32 %v2220_v28 }
 0x6f0   :  { %v3360_v29 = vpop.eup %3359 }
 0x6f1   :  { %v3362_v30 = vpop.eup %3361  ;;  %v2213_v31 = vmul.f32 0.5, %v3360_v29 }
 0x6f2   :  { %v2217_v32 = vmul.f32 0.5, %v3362_v30 }
 0x6f3   :  { %v2214_v33 = vadd.f32 0.5, %v2213_v31 }
 0x6f4   :  { %v2218_v34 = vadd.f32 0.5, %v2217_v32 }
 0x6f6   :  { %v3364_v35 = vpop.eup %3363  ;;  %v2224_v36 = vmul.f32 %v2218_v34, %v1916_v62 }
 0x6f7   :  { %v2225_v37 = vmul.f32 %v3364_v35, %v2214_v33 }
 0x6f8   :  { %v3366_v39 = vpop.eup %3365 }
 0x6f9   :  { %v2226_v38 = vadd.f32 %v2225_v37, %v2224_v36  ;;  %v2222_v40 = vmul.f32 0.5, %v3366_v39 }
 0x6fb   :  { %3367 = vtanh.f32 %v2226_v38  ;;  %v2223_v41 = vadd.f32 0.5, %v2222_v40 }
 0x705   :  { %v3368_v42 = vpop.eup %3367 }
 0x706   :  { %v2228_v43 = vmul.f32 %v3368_v42, %v2223_v41 }
 0x708   :  { %3062 = vmatmul.mubr.msk.f32.vlgmr.msra.gmra.mrb[28].mxu0 %vm63_vm1, %v2228_v43  ;;  %3073 = vmatmul.mubr.msk.f32.vlgmr.msra.gmra.mrb[28].mxu1 %vm63_vm1, %v2228_v43 }
 0x709   :  { %3279 = vmatpush3.bf16.msra.mxu0 %v3519_v18  ;;  %3285 = vmatpush3.bf16.msra.mxu1 %v3524_v21  ;;  %v2230_v18 = vld [vmem:[#allocation2 + $0x38] sm:$0x3]  ;;  %v2231_v21 = vld [vmem:[#allocation2 + $0x3a] sm:$0x3] }
 0x70a   :  { %3280 = vmatprep.subr.bf16.mxu0 %v3457_v0  ;;  %3286 = vmatprep.subr.bf16.mxu1 %v3457_v0 }
 0x70b   :  { %3083 = vmatprep.mubr.msk.f32.mxu0 %vm3458_vm0, %v3459_v1  ;;  %3094 = vmatprep.mubr.msk.f32.mxu1 %vm3458_vm0, %v3459_v1  ;;  %v2232_v1 = vld [vmem:[#allocation2 + $0x3c] sm:$0x3] }
 0x70d   :  { %3282 = vmatpush3.bf16.msra.mxu0 %v3529_v24  ;;  %3288 = vmatpush3.bf16.msra.mxu1 %v3535_v25  ;;  %v2233_v24 = vld [vmem:[#allocation2 + $0x3e] sm:$0x3] }
 0x710   :  { %3084 = vmatmul.mubr.msk.f32.vlgmr.msra.gmra.mrb[30].mxu0 %vm63_vm1, %v2228_v43  ;;  %3095 = vmatmul.mubr.msk.f32.vlgmr.msra.gmra.mrb[30].mxu1 %vm63_vm1, %v2228_v43 }
 0x7db   :  { %v2303_v44 = vpop.f32.mrb[28].mxu0  ;;  %v2374_v45 = vpop.f32.mrb[28].mxu1 }
 0x7dc   :  { %v2307_v46 = vadd.f32 %v2303_v44, %v2230_v18  ;;  %v2378_v0 = vadd.f32 %v2374_v45, %v2231_v21  ;;  %v3063_v47 = vpop.f32.mrb[29].mxu0  ;;  %v3074_v48 = vpop.f32.mrb[29].mxu1 }
 0x7de   :  { %v2521_v49 = vmul.f32 0.5, %v2307_v46  ;;  %v2525_v50 = vmul.f32 0.5, %v2378_v0 }
 0x7e0   :  { %3369 = vtanh.f32 %v2521_v49 }
 0x7e1   :  { %3371 = vtanh.f32 %v2525_v50 }
 0x7e3   :  { %v2445_v51 = vpop.f32.mrb[30].mxu0  ;;  %v2516_v25 = vpop.f32.mrb[30].mxu1 }
 0x7e4   :  { %v2449_v52 = vadd.f32 %v2445_v51, %v2232_v1  ;;  %v3085_v53 = vpop.f32.mrb[31].mxu0  ;;  %v3096_v54 = vpop.f32.mrb[31].mxu1  ;;  %v2520_v55 = vadd.f32 %v2516_v25, %v2233_v24 }
 0x7e6   :  { %3373 = vtanh.f32 %v2449_v52  ;;  %v2530_v56 = vmul.f32 0.5, %v2520_v55 }
 0x7e8   :  { %3375 = vtanh.f32 %v2530_v56 }
 0x7ea   :  { %v3370_v57 = vpop.eup %3369 }
 0x7eb   :  { %v3372_v58 = vpop.eup %3371  ;;  %v2523_v59 = vmul.f32 0.5, %v3370_v57 }
 0x7ec   :  { %v2527_v60 = vmul.f32 0.5, %v3372_v58 }
 0x7ed   :  { %v2524_v61 = vadd.f32 0.5, %v2523_v59 }
 0x7ee   :  { %v2528_v62 = vadd.f32 0.5, %v2527_v60 }
 0x7f0   :  { %v3374_v63 = vpop.eup %3373  ;;  %v2534_v2 = vmul.f32 %v2528_v62, %v2226_v38 }
 0x7f1   :  { %v2535_v3 = vmul.f32 %v3374_v63, %v2524_v61 }
 0x7f2   :  { %v3376_v6 = vpop.eup %3375 }
 0x7f3   :  { %v2536_v4 = vadd.f32 %v2535_v3, %v2534_v2  ;;  %v2532_v5 = vmul.f32 0.5, %v3376_v6 }
 0x7f5   :  { %3377 = vtanh.f32 %v2536_v4  ;;  %v2533_v9 = vadd.f32 0.5, %v2532_v5 }
 0x7ff   :  { %v3378_v7 = vpop.eup %3377 }
 0x800   :  { %v2538_v8 = vmul.f32 %v3378_v7, %v2533_v9 }
 0x802   :  { %2540 = vst.msk [vmem:[#allocation7] sm:$0x3] %vm2539_vm2, %v2538_v8 }
 0x803   :  { %3434 = shalt.err (!%p3431_p6)
}
 0x804   :  { %s3435_s12 = scalar_lea.hbm %s3754_s2, 32 }
 0x805   :  { %p3436_p7 = scmp.ne.s32.totalorder %s3754_s2, %s3435_s12  ;;  %p3439_p8 = scmp.lt.u32.totalorder %s3435_s12, %s3754_s2 }
 0x807   :  { %p3441_p9 = pnand %p3439_p8, %p3436_p7 }
 0x809   :  { %3444 = shalt.err (!%p3441_p9)
}
 0x80a   :  { %2550 = dma.vmem_to_hbm [thread:$0]  %s2548_s8, 32, %s3754_s2, [#allocation4]  }
 0x80b   :  { %3449 = dma.done.wait [#allocation4], 32  }
 0x80c   :  { %3450 = vsyncadd [#allocation4], 4294967264 }
 0x80d   :  { %2554 = vsyncpa [#allocation3], 1 }
 0x80e   :  { %2555 = vsyncpa [#allocation6], 1 }
 0x80f   :  { %2556 = vsyncpa [#allocation4], 1 }

</bundles_post_ra>
